<compile_context>
chip_gen: v6e
topology: v6e:2x2x1
jax: 0.10.0
libtpu: 0.0.40
codegen_flags: <defaults>
</compile_context>

<pallas_src>
import functools

import jax
import jax.numpy as jnp
from jax import lax
from jax.experimental import pallas as pl
from jax.experimental.pallas import tpu as pltpu

LANE = 128


# ---------------------------------------------------------------------------
# Helpers
# ---------------------------------------------------------------------------
def _round_up(c, m=LANE):
    return ((c + m - 1) // m) * m


def _pad_axis(a, axis, target):
    if a.shape[axis] == target:
        return a
    cfg = [(0, 0)] * a.ndim
    cfg[axis] = (0, target - a.shape[axis])
    return jnp.pad(a, cfg)


def _pick_row_tile(hout, wout, target_rows=128):
    """Largest divisor of hout with tile_rows * wout ~<= target_rows, so the
    (tile_rows*wout, Cout_pad) f32 accumulator fits in the vreg file."""
    th = max(1, min(hout, max(1, target_rows // max(1, wout))))
    while hout % th:
        th -= 1
    return th


# ---------------------------------------------------------------------------
# Fused pre-activation conv kernel:
#   a = relu(x * bn_scale + bn_bias)            (computed once per image -> VMEM scratch,
#                                                zero border == conv zero padding)
#   out  = conv_kxk(a, w, stride) + conv_bias [+ residual]
#   sc   = conv_1x1(raw x, wd, stride) + wd_bias        (optional fused shortcut)
# Grid: (batch, output-row tiles).
# ---------------------------------------------------------------------------
def _preact_conv_kernel(x_ref, w_ref, bn_s_ref, bn_b_ref, cb_ref, *rest,
                        stride, kh, kw, pad, h_in, w_in, th, wout,
                        cinp, coutp, emit_shortcut, add_residual):
    rest = list(rest)
    if emit_shortcut:
        wd_ref = rest.pop(0)
        cbd_ref = rest.pop(0)
    if add_residual:
        res_ref = rest.pop(0)
    out_ref = rest.pop(0)
    if emit_shortcut:
        sc_ref = rest.pop(0)
    a_scr = rest.pop(0)

    t = pl.program_id(1)

    # Pre-activation: done once per image (row-tile axis is sequential / "arbitrary").
    @pl.when(t == 0)
    def _():
        a_scr[...] = jnp.zeros_like(a_scr)                       # zero border = conv pad
        xv = x_ref[0].astype(jnp.float32)                        # (h_in, w_in, cinp)
        act = jnp.maximum(xv * bn_s_ref[...] + bn_b_ref[...], 0.0)
        # TODO(synk): training-mode Dropout would be applied here for the 2nd conv.
        a_scr[pl.ds(pad, h_in), pl.ds(pad, w_in), :] = act.astype(a_scr.dtype)

    # Conv over this output-row tile: loop over kh, fold kw*Cin into the MXU K dim.
    row0 = t * th * stride                                       # first tap row (padded coords)
    rspan = (th - 1) * stride + 1
    acc = jnp.zeros((th * wout, coutp), jnp.float32)
    for i in range(kh):
        rows = a_scr[pl.ds(row0 + i, rspan), :, :]               # (rspan, Wp, cinp) bf16
        if stride > 1:
            rows = rows[::stride]                                # (th, Wp, cinp)
            taps = [rows[:, j:j + (wout - 1) * stride + 1:stride, :] for j in range(kw)]
        else:
            taps = [rows[:, j:j + wout, :] for j in range(kw)]
        patch = taps[0] if kw == 1 else jnp.concatenate(taps, axis=-1)
        acc = acc + jnp.dot(patch.reshape(th * wout, kw * cinp), w_ref[i],
                            preferred_element_type=jnp.float32)

    acc = acc + cb_ref[...]                                      # conv bias
    if add_residual:
        acc = acc + res_ref[0].reshape(th * wout, coutp).astype(jnp.float32)
    out_ref[...] = acc.reshape(1, th, wout, coutp).astype(out_ref.dtype)

    # Fused 1x1 shortcut conv on the RAW (non-activated) input block.
    if emit_shortcut:
        xrows = x_ref[0, pl.ds(t * th * stride, rspan), :, :]    # (rspan, w_in, cinp)
        if stride > 1:
            xrows = xrows[::stride, ::stride, :]                 # (th, wout, cinp)
        sc = jnp.dot(xrows.astype(jnp.bfloat16).reshape(th * wout, cinp), wd_ref[...],
                     preferred_element_type=jnp.float32)
        sc = sc + cbd_ref[...]
        sc_ref[...] = sc.reshape(1, th, wout, coutp).astype(sc_ref.dtype)


def _preact_conv(x, w, bn_s, bn_b, cb, *, stride, pad,
                 shortcut_w=None, shortcut_b=None, residual=None,
                 out_dtype=jnp.float32, sc_dtype=jnp.float32):
    """x: (N, H, W, Cin_pad); w: (kh, kw, Cin_pad, Cout_pad) bf16; bn_s/bn_b: (1, Cin_pad);
    cb: (1, Cout_pad). Optional shortcut_w: (Cin_pad, Cout_pad) bf16 + shortcut_b,
    optional residual: (N, Hout, Wout, Cout_pad)."""
    n, h_in, w_in, cinp = x.shape
    kh, kw, _, coutp = w.shape
    hout = (h_in + 2 * pad - kh) // stride + 1
    wout = (w_in + 2 * pad - kw) // stride + 1
    th = _pick_row_tile(hout, wout)
    n_tiles = hout // th

    emit_shortcut = shortcut_w is not None
    add_residual = residual is not None

    w_r = w.reshape(kh, kw * cinp, coutp)                        # fold kw*Cin into K

    in_specs = [
        pl.BlockSpec((1, h_in, w_in, cinp), lambda nn, tt: (nn, 0, 0, 0)),
        pl.BlockSpec((kh, kw * cinp, coutp), lambda nn, tt: (0, 0, 0)),
        pl.BlockSpec((1, cinp), lambda nn, tt: (0, 0)),
        pl.BlockSpec((1, cinp), lambda nn, tt: (0, 0)),
        pl.BlockSpec((1, coutp), lambda nn, tt: (0, 0)),
    ]
    args = [x, w_r, bn_s, bn_b, cb]
    if emit_shortcut:
        in_specs += [pl.BlockSpec((cinp, coutp), lambda nn, tt: (0, 0)),
                     pl.BlockSpec((1, coutp), lambda nn, tt: (0, 0))]
        args += [shortcut_w, shortcut_b]
    if add_residual:
        in_specs.append(pl.BlockSpec((1, th, wout, coutp), lambda nn, tt: (nn, tt, 0, 0)))
        args.append(residual)

    tile_spec = pl.BlockSpec((1, th, wout, coutp), lambda nn, tt: (nn, tt, 0, 0))
    if emit_shortcut:
        out_shape = (jax.ShapeDtypeStruct((n, hout, wout, coutp), out_dtype),
                     jax.ShapeDtypeStruct((n, hout, wout, coutp), sc_dtype))
        out_specs = (tile_spec, tile_spec)
    else:
        out_shape = jax.ShapeDtypeStruct((n, hout, wout, coutp), out_dtype)
        out_specs = tile_spec

    kernel = functools.partial(
        _preact_conv_kernel, stride=stride, kh=kh, kw=kw, pad=pad,
        h_in=h_in, w_in=w_in, th=th, wout=wout, cinp=cinp, coutp=coutp,
        emit_shortcut=emit_shortcut, add_residual=add_residual)

    return pl.pallas_call(
        kernel,
        out_shape=out_shape,
        grid=(n, n_tiles),
        in_specs=in_specs,
        out_specs=out_specs,
        scratch_shapes=[pltpu.VMEM((h_in + 2 * pad, w_in + 2 * pad, cinp), jnp.bfloat16)],
        compiler_params=pltpu.CompilerParams(
            # Batch axis parallel (megacore on v7x); row-tile axis reuses the
            # pre-activation scratch, so it must stay sequential ("arbitrary").
            dimension_semantics=("parallel", "arbitrary"),
            # TODO(synk): re-derive per generation / layer size (v7x has 64 MiB VMEM).
            vmem_limit_bytes=32 * 1024 * 1024),
    )(*args)


# ---------------------------------------------------------------------------
# WideBasic: parameter init + forward.
# ---------------------------------------------------------------------------
def init_wide_basic_params(key, in_channels, out_channels, stride):
    """Random params; BatchNorm running stats pre-folded to (scale, bias)."""
    eps = 1e-5  # PyTorch BatchNorm2d default
    has_sc_conv = (in_channels != out_channels) or (stride != 1)
    keys = jax.random.split(key, 8)

    def bn_fold(k, c):
        kg, kb, km, kv = jax.random.split(k, 4)
        gamma = jax.random.uniform(kg, (c,), jnp.float32, 0.5, 1.5)
        beta = jax.random.normal(kb, (c,), jnp.float32) * 0.1
        mean = jax.random.normal(km, (c,), jnp.float32) * 0.1
        var = jax.random.uniform(kv, (c,), jnp.float32, 0.5, 1.5)
        scale = gamma / jnp.sqrt(var + eps)
        bias = beta - mean * scale
        return scale.reshape(1, c), bias.reshape(1, c)

    p = {}
    p['s1'], p['b1'] = bn_fold(keys[0], in_channels)
    p['w1'] = jax.random.normal(keys[1], (3, 3, in_channels, out_channels), jnp.float32) * 0.1
    p['cb1'] = jax.random.normal(keys[2], (out_channels,), jnp.float32) * 0.1
    p['s2'], p['b2'] = bn_fold(keys[3], out_channels)
    p['w2'] = jax.random.normal(keys[4], (3, 3, out_channels, out_channels), jnp.float32) * 0.1
    p['cb2'] = jax.random.normal(keys[5], (out_channels,), jnp.float32) * 0.1
    if has_sc_conv:
        p['wd'] = jax.random.normal(keys[6], (1, 1, in_channels, out_channels), jnp.float32) * 0.1
        p['cbd'] = jax.random.normal(keys[7], (out_channels,), jnp.float32) * 0.1
    return p


def wide_basic_forward(x_nchw, params, stride):
    """Pallas WideBasic forward. x_nchw: (N, Cin, H, W) -> (N, Cout, H', W')."""
    n, cin, h, w = x_nchw.shape
    cout = params['w1'].shape[-1]
    cinp, coutp = _round_up(cin), _round_up(cout)
    has_sc_conv = (cin != cout) or (stride != 1)

    x = jnp.transpose(x_nchw, (0, 2, 3, 1))                      # NCHW -> NHWC
    x = _pad_axis(x, 3, cinp)                                    # lane-dense channels

    def pad_w(wgt, ci, co):
        return _pad_axis(_pad_axis(wgt, 2, ci), 3, co).astype(jnp.bfloat16)

    w1 = pad_w(params['w1'], cinp, coutp)
    w2 = pad_w(params['w2'], coutp, coutp)
    s1 = _pad_axis(params['s1'], 1, cinp)
    b1 = _pad_axis(params['b1'], 1, cinp)
    s2 = _pad_axis(params['s2'], 1, coutp)
    b2 = _pad_axis(params['b2'], 1, coutp)
    cb1 = _pad_axis(params['cb1'].reshape(1, -1), 1, coutp)
    cb2 = _pad_axis(params['cb2'].reshape(1, -1), 1, coutp)

    # Kernel 1: c1 = conv3x3(relu(bn1(x)), stride) + bias   [bf16 intermediate]
    #           shortcut = conv1x1(raw x, stride) + bias    (fused: same x block in VMEM)
    if has_sc_conv:
        wd = pad_w(params['wd'], cinp, coutp)[0, 0]              # (cinp, coutp)
        cbd = _pad_axis(params['cbd'].reshape(1, -1), 1, coutp)
        c1, shortcut = _preact_conv(x, w1, s1, b1, cb1, stride=stride, pad=1,
                                    shortcut_w=wd, shortcut_b=cbd,
                                    out_dtype=jnp.bfloat16, sc_dtype=jnp.float32)
    else:
        c1 = _preact_conv(x, w1, s1, b1, cb1, stride=stride, pad=1,
                          out_dtype=jnp.bfloat16)
        shortcut = x                                             # identity shortcut

    # Kernel 2: out = conv3x3(relu(bn2(c1)), 1) + bias + shortcut  (residual add fused)
    out = _preact_conv(c1, w2, s2, b2, cb2, stride=1, pad=1,
                       residual=shortcut, out_dtype=jnp.float32)

    out = out[..., :cout]                                        # strip channel padding
    return jnp.transpose(out, (0, 3, 1, 2))                      # NHWC -> NCHW


# ---------------------------------------------------------------------------
# Pure-JAX reference (bf16 matmul inputs + f32 accumulation, like the kernels).
# ---------------------------------------------------------------------------
def _ref_conv(x, w, stride, pad):
    return lax.conv_general_dilated(
        x.astype(jnp.bfloat16), w.astype(jnp.bfloat16), (stride, stride),
        [(pad, pad), (pad, pad)], dimension_numbers=('NHWC', 'HWIO', 'NHWC'),
        preferred_element_type=jnp.float32)


def wide_basic_reference(x_nchw, params, stride):
    cin = x_nchw.shape[1]
    cout = params['w1'].shape[-1]
    has_sc_conv = (cin != cout) or (stride != 1)

    x = jnp.transpose(x_nchw, (0, 2, 3, 1))
    a1 = jnp.maximum(x * params['s1'].reshape(1, 1, 1, -1)
                     + params['b1'].reshape(1, 1, 1, -1), 0.0)
    c1 = _ref_conv(a1, params['w1'], stride, 1) + params['cb1'].reshape(1, 1, 1, -1)
    c1 = c1.astype(jnp.bfloat16).astype(jnp.float32)             # kernel stores c1 as bf16
    a2 = jnp.maximum(c1 * params['s2'].reshape(1, 1, 1, -1)
                     + params['b2'].reshape(1, 1, 1, -1), 0.0)
    # Dropout: eval-mode identity.
    c2 = _ref_conv(a2, params['w2'], 1, 1) + params['cb2'].reshape(1, 1, 1, -1)
    if has_sc_conv:
        sc = _ref_conv(x, params['wd'], stride, 0) + params['cbd'].reshape(1, 1, 1, -1)
    else:
        sc = x
    return jnp.transpose(c2 + sc, (0, 3, 1, 2))


if __name__ == "__main__":
    key = jax.random.PRNGKey(0)
    xkey, pkey = jax.random.split(key)

    # WideBasic(in_channels=4, out_channels=8, stride=1): 1x1 shortcut conv is active.
    N, CIN, H, W = 2, 4, 16, 16
    COUT, STRIDE = 8, 1

    x = jax.random.normal(xkey, (N, CIN, H, W), jnp.float32)
    params = init_wide_basic_params(pkey, CIN, COUT, STRIDE)

    out = jax.block_until_ready(wide_basic_forward(x, params, STRIDE))
    ref = jax.block_until_ready(wide_basic_reference(x, params, STRIDE))

    assert out.shape == ref.shape == (N, COUT, H // STRIDE, W // STRIDE)
    assert jnp.allclose(out, ref, atol=2e-2, rtol=2e-2), (
        f"mismatch vs reference: max abs err {jnp.max(jnp.abs(out - ref))}")

    print("KERNEL_OK")
</pallas_src>

<mosaic_0001>
module attributes {stable_mosaic.version = 11 : i64} {
  func.func @_preact_conv_kernel(%arg0: i32, %arg1: i32, %arg2: memref<1x16x16x128xf32, #tpu.memory_space<vmem>>, %arg3: memref<3x384x128xbf16, #tpu.memory_space<vmem>>, %arg4: memref<1x128xf32, #tpu.memory_space<vmem>>, %arg5: memref<1x128xf32, #tpu.memory_space<vmem>>, %arg6: memref<1x128xf32, #tpu.memory_space<vmem>>, %arg7: memref<128x128xbf16, #tpu.memory_space<vmem>>, %arg8: memref<1x128xf32, #tpu.memory_space<vmem>>, %arg9: memref<1x8x16x128xbf16, #tpu.memory_space<vmem>>, %arg10: memref<1x8x16x128xf32, #tpu.memory_space<vmem>>, %arg11: memref<18x18x128xbf16, #tpu.memory_space<vmem>>) attributes {dimension_semantics = [#tpu.dimension_semantics<parallel>, #tpu.dimension_semantics<arbitrary>], iteration_bounds = array<i64: 2, 2>, scalar_prefetch = 0 : i64, scratch_operands = 1 : i64, tpu.core_type = #tpu.core_type<tc>, window_params = [{transform_indices = @transform_0, window_bounds = array<i64: 1, 16, 16, 128>}, {pipeline_mode = #tpu.pipeline_mode<synchronous>, transform_indices = @transform_1, window_bounds = array<i64: 3, 384, 128>}, {pipeline_mode = #tpu.pipeline_mode<synchronous>, transform_indices = @transform_2, window_bounds = array<i64: 1, 128>}, {pipeline_mode = #tpu.pipeline_mode<synchronous>, transform_indices = @transform_3, window_bounds = array<i64: 1, 128>}, {pipeline_mode = #tpu.pipeline_mode<synchronous>, transform_indices = @transform_4, window_bounds = array<i64: 1, 128>}, {pipeline_mode = #tpu.pipeline_mode<synchronous>, transform_indices = @transform_5, window_bounds = array<i64: 128, 128>}, {pipeline_mode = #tpu.pipeline_mode<synchronous>, transform_indices = @transform_6, window_bounds = array<i64: 1, 128>}, {transform_indices = @transform_7, window_bounds = array<i64: 1, 8, 16, 128>}, {transform_indices = @transform_8, window_bounds = array<i64: 1, 8, 16, 128>}]} {
    %c0_i32 = arith.constant 0 : i32
    %0 = arith.cmpi eq, %arg1, %c0_i32 : i32
    %1 = arith.extui %0 : i1 to i32
    %c0_i32_0 = arith.constant 0 : i32
    %2 = arith.cmpi ne, %1, %c0_i32_0 : i32
    scf.if %2 {
      %cst_38 = arith.constant 0.000000e+00 : bf16
      %62 = vector.broadcast %cst_38 : bf16 to vector<18x18x128xbf16>
      %c0_39 = arith.constant 0 : index
      %c0_40 = arith.constant 0 : index
      %c0_41 = arith.constant 0 : index
      %63 = vector.load %arg11[%c0_39, %c0_40, %c0_41] : memref<18x18x128xbf16, #tpu.memory_space<vmem>>, vector<18x18x128xbf16>
      tpu.vector_store %arg11[%c0_39, %c0_40, %c0_41], %62 {strides = array<i32>} : memref<18x18x128xbf16, #tpu.memory_space<vmem>>, vector<18x18x128xbf16>,
      %c0_42 = arith.constant 0 : index
      %c0_43 = arith.constant 0 : index
      %c0_44 = arith.constant 0 : index
      %c0_45 = arith.constant 0 : index
      %64 = vector.load %arg2[%c0_42, %c0_43, %c0_44, %c0_45] : memref<1x16x16x128xf32, #tpu.memory_space<vmem>>, vector<1x16x16x128xf32>
      %65 = vector.shape_cast %64 : vector<1x16x16x128xf32> to vector<16x16x128xf32>
      %c0_46 = arith.constant 0 : index
      %c0_47 = arith.constant 0 : index
      %66 = vector.load %arg4[%c0_46, %c0_47] : memref<1x128xf32, #tpu.memory_space<vmem>>, vector<1x128xf32>
      %67 = vector.shape_cast %66 : vector<1x128xf32> to vector<1x1x128xf32>
      %68 = vector.broadcast %67 : vector<1x1x128xf32> to vector<16x16x128xf32>
      %69 = arith.mulf %65, %68 : vector<16x16x128xf32>
      %c0_48 = arith.constant 0 : index
      %c0_49 = arith.constant 0 : index
      %70 = vector.load %arg5[%c0_48, %c0_49] : memref<1x128xf32, #tpu.memory_space<vmem>>, vector<1x128xf32>
      %71 = vector.shape_cast %70 : vector<1x128xf32> to vector<1x1x128xf32>
      %72 = vector.broadcast %71 : vector<1x1x128xf32> to vector<16x16x128xf32>
      %73 = arith.addf %69, %72 : vector<16x16x128xf32>
      %cst_50 = arith.constant 0.000000e+00 : f32
      %74 = vector.broadcast %cst_50 : f32 to vector<16x16x128xf32>
      %75 = arith.maximumf %73, %74 : vector<16x16x128xf32>
      %76 = arith.truncf %75 : vector<16x16x128xf32> to vector<16x16x128xbf16>
      %c1_51 = arith.constant 1 : index
      %c1_52 = arith.constant 1 : index
      %c0_53 = arith.constant 0 : index
      %77 = vector.load %arg11[%c1_51, %c1_52, %c0_53] : memref<18x18x128xbf16, #tpu.memory_space<vmem>>, vector<16x16x128xbf16>
      tpu.vector_store %arg11[%c1_51, %c1_52, %c0_53], %76 {strides = array<i32>} : memref<18x18x128xbf16, #tpu.memory_space<vmem>>, vector<16x16x128xbf16>,
    } else {
    }
    %c8_i32 = arith.constant 8 : i32
    %3 = arith.muli %arg1, %c8_i32 : i32
    %c1_i32 = arith.constant 1 : i32
    %4 = arith.muli %3, %c1_i32 : i32
    %cst = arith.constant 0.000000e+00 : f32
    %5 = vector.broadcast %cst : f32 to vector<128x128xf32>
    %c0_i32_1 = arith.constant 0 : i32
    %6 = arith.addi %4, %c0_i32_1 : i32
    %7 = arith.index_cast %6 : i32 to index
    %c0 = arith.constant 0 : index
    %c0_2 = arith.constant 0 : index
    %8 = vector.load %arg11[%7, %c0, %c0_2] : memref<18x18x128xbf16, #tpu.memory_space<vmem>>, vector<8x18x128xbf16>
    %9 = vector.extract_strided_slice %8 {offsets = [0, 0, 0], sizes = [8, 16, 128], strides = [1, 1, 1]} : vector<8x18x128xbf16> to vector<8x16x128xbf16>
    %10 = vector.extract_strided_slice %8 {offsets = [0, 1, 0], sizes = [8, 16, 128], strides = [1, 1, 1]} : vector<8x18x128xbf16> to vector<8x16x128xbf16>
    %11 = vector.extract_strided_slice %8 {offsets = [0, 2, 0], sizes = [8, 16, 128], strides = [1, 1, 1]} : vector<8x18x128xbf16> to vector<8x16x128xbf16>
    %12 = tpu.concatenate %9, %10, %11 in 2 : vector<8x16x128xbf16>, vector<8x16x128xbf16>, vector<8x16x128xbf16> -> vector<8x16x384xbf16>
    %13 = vector.shape_cast %12 : vector<8x16x384xbf16> to vector<128x384xbf16>
    %c0_3 = arith.constant 0 : index
    %c0_4 = arith.constant 0 : index
    %c0_5 = arith.constant 0 : index
    %14 = vector.load %arg3[%c0_3, %c0_4, %c0_5] : memref<3x384x128xbf16, #tpu.memory_space<vmem>>, vector<1x384x128xbf16>
    %15 = vector.shape_cast %14 : vector<1x384x128xbf16> to vector<384x128xbf16>
    %cst_6 = arith.constant dense<0.000000e+00> : vector<128x128xf32>
    %16 = tpu.matmul %13, %15, %cst_6 {dimension_numbers = #tpu.dot_dimension_numbers<[1], [0], [0], [1], [0, 0, 1, 1], [], []>} : vector<128x384xbf16>, vector<384x128xbf16>, vector<128x128xf32> -> vector<128x128xf32>
    %17 = arith.addf %5, %16 : vector<128x128xf32>
    %c1_i32_7 = arith.constant 1 : i32
    %18 = arith.addi %4, %c1_i32_7 : i32
    %19 = arith.index_cast %18 : i32 to index
    %c0_8 = arith.constant 0 : index
    %c0_9 = arith.constant 0 : index
    %20 = vector.load %arg11[%19, %c0_8, %c0_9] : memref<18x18x128xbf16, #tpu.memory_space<vmem>>, vector<8x18x128xbf16>
    %21 = vector.extract_strided_slice %20 {offsets = [0, 0, 0], sizes = [8, 16, 128], strides = [1, 1, 1]} : vector<8x18x128xbf16> to vector<8x16x128xbf16>
    %22 = vector.extract_strided_slice %20 {offsets = [0, 1, 0], sizes = [8, 16, 128], strides = [1, 1, 1]} : vector<8x18x128xbf16> to vector<8x16x128xbf16>
    %23 = vector.extract_strided_slice %20 {offsets = [0, 2, 0], sizes = [8, 16, 128], strides = [1, 1, 1]} : vector<8x18x128xbf16> to vector<8x16x128xbf16>
    %24 = tpu.concatenate %21, %22, %23 in 2 : vector<8x16x128xbf16>, vector<8x16x128xbf16>, vector<8x16x128xbf16> -> vector<8x16x384xbf16>
    %25 = vector.shape_cast %24 : vector<8x16x384xbf16> to vector<128x384xbf16>
    %c1 = arith.constant 1 : index
    %c0_10 = arith.constant 0 : index
    %c0_11 = arith.constant 0 : index
    %26 = vector.load %arg3[%c1, %c0_10, %c0_11] : memref<3x384x128xbf16, #tpu.memory_space<vmem>>, vector<1x384x128xbf16>
    %27 = vector.shape_cast %26 : vector<1x384x128xbf16> to vector<384x128xbf16>
    %cst_12 = arith.constant dense<0.000000e+00> : vector<128x128xf32>
    %28 = tpu.matmul %25, %27, %cst_12 {dimension_numbers = #tpu.dot_dimension_numbers<[1], [0], [0], [1], [0, 0, 1, 1], [], []>} : vector<128x384xbf16>, vector<384x128xbf16>, vector<128x128xf32> -> vector<128x128xf32>
    %29 = arith.addf %17, %28 : vector<128x128xf32>
    %c2_i32 = arith.constant 2 : i32
    %30 = arith.addi %4, %c2_i32 : i32
    %31 = arith.index_cast %30 : i32 to index
    %c0_13 = arith.constant 0 : index
    %c0_14 = arith.constant 0 : index
    %32 = vector.load %arg11[%31, %c0_13, %c0_14] : memref<18x18x128xbf16, #tpu.memory_space<vmem>>, vector<8x18x128xbf16>
    %33 = vector.extract_strided_slice %32 {offsets = [0, 0, 0], sizes = [8, 16, 128], strides = [1, 1, 1]} : vector<8x18x128xbf16> to vector<8x16x128xbf16>
    %34 = vector.extract_strided_slice %32 {offsets = [0, 1, 0], sizes = [8, 16, 128], strides = [1, 1, 1]} : vector<8x18x128xbf16> to vector<8x16x128xbf16>
    %35 = vector.extract_strided_slice %32 {offsets = [0, 2, 0], sizes = [8, 16, 128], strides = [1, 1, 1]} : vector<8x18x128xbf16> to vector<8x16x128xbf16>
    %36 = tpu.concatenate %33, %34, %35 in 2 : vector<8x16x128xbf16>, vector<8x16x128xbf16>, vector<8x16x128xbf16> -> vector<8x16x384xbf16>
    %37 = vector.shape_cast %36 : vector<8x16x384xbf16> to vector<128x384xbf16>
    %c2 = arith.constant 2 : index
    %c0_15 = arith.constant 0 : index
    %c0_16 = arith.constant 0 : index
    %38 = vector.load %arg3[%c2, %c0_15, %c0_16] : memref<3x384x128xbf16, #tpu.memory_space<vmem>>, vector<1x384x128xbf16>
    %39 = vector.shape_cast %38 : vector<1x384x128xbf16> to vector<384x128xbf16>
    %cst_17 = arith.constant dense<0.000000e+00> : vector<128x128xf32>
    %40 = tpu.matmul %37, %39, %cst_17 {dimension_numbers = #tpu.dot_dimension_numbers<[1], [0], [0], [1], [0, 0, 1, 1], [], []>} : vector<128x384xbf16>, vector<384x128xbf16>, vector<128x128xf32> -> vector<128x128xf32>
    %41 = arith.addf %29, %40 : vector<128x128xf32>
    %c0_18 = arith.constant 0 : index
    %c0_19 = arith.constant 0 : index
    %42 = vector.load %arg6[%c0_18, %c0_19] : memref<1x128xf32, #tpu.memory_space<vmem>>, vector<1x128xf32>
    %43 = vector.broadcast %42 : vector<1x128xf32> to vector<128x128xf32>
    %44 = arith.addf %41, %43 : vector<128x128xf32>
    %45 = vector.shape_cast %44 : vector<128x128xf32> to vector<1x8x16x128xf32>
    %46 = arith.truncf %45 : vector<1x8x16x128xf32> to vector<1x8x16x128xbf16>
    %c0_20 = arith.constant 0 : index
    %c0_21 = arith.constant 0 : index
    %c0_22 = arith.constant 0 : index
    %c0_23 = arith.constant 0 : index
    %47 = vector.load %arg9[%c0_20, %c0_21, %c0_22, %c0_23] : memref<1x8x16x128xbf16, #tpu.memory_space<vmem>>, vector<1x8x16x128xbf16>
    tpu.vector_store %arg9[%c0_20, %c0_21, %c0_22, %c0_23], %46 {strides = array<i32>} : memref<1x8x16x128xbf16, #tpu.memory_space<vmem>>, vector<1x8x16x128xbf16>,
    %c8_i32_24 = arith.constant 8 : i32
    %48 = arith.muli %arg1, %c8_i32_24 : i32
    %c1_i32_25 = arith.constant 1 : i32
    %49 = arith.muli %48, %c1_i32_25 : i32
    %c0_26 = arith.constant 0 : index
    %50 = arith.index_cast %49 : i32 to index
    %c0_27 = arith.constant 0 : index
    %c0_28 = arith.constant 0 : index
    %51 = vector.load %arg2[%c0_26, %50, %c0_27, %c0_28] : memref<1x16x16x128xf32, #tpu.memory_space<vmem>>, vector<1x8x16x128xf32>
    %52 = vector.shape_cast %51 : vector<1x8x16x128xf32> to vector<8x16x128xf32>
    %53 = arith.truncf %52 : vector<8x16x128xf32> to vector<8x16x128xbf16>
    %54 = vector.shape_cast %53 : vector<8x16x128xbf16> to vector<128x128xbf16>
    %c0_29 = arith.constant 0 : index
    %c0_30 = arith.constant 0 : index
    %55 = vector.load %arg7[%c0_29, %c0_30] : memref<128x128xbf16, #tpu.memory_space<vmem>>, vector<128x128xbf16>
    %cst_31 = arith.constant dense<0.000000e+00> : vector<128x128xf32>
    %56 = tpu.matmul %54, %55, %cst_31 {dimension_numbers = #tpu.dot_dimension_numbers<[1], [0], [0], [1], [0, 0, 1, 1], [], []>} : vector<128x128xbf16>, vector<128x128xbf16>, vector<128x128xf32> -> vector<128x128xf32>
    %c0_32 = arith.constant 0 : index
    %c0_33 = arith.constant 0 : index
    %57 = vector.load %arg8[%c0_32, %c0_33] : memref<1x128xf32, #tpu.memory_space<vmem>>, vector<1x128xf32>
    %58 = vector.broadcast %57 : vector<1x128xf32> to vector<128x128xf32>
    %59 = arith.addf %56, %58 : vector<128x128xf32>
    %60 = vector.shape_cast %59 : vector<128x128xf32> to vector<1x8x16x128xf32>
    %c0_34 = arith.constant 0 : index
    %c0_35 = arith.constant 0 : index
    %c0_36 = arith.constant 0 : index
    %c0_37 = arith.constant 0 : index
    %61 = vector.load %arg10[%c0_34, %c0_35, %c0_36, %c0_37] : memref<1x8x16x128xf32, #tpu.memory_space<vmem>>, vector<1x8x16x128xf32>
    tpu.vector_store %arg10[%c0_34, %c0_35, %c0_36, %c0_37], %60 {strides = array<i32>} : memref<1x8x16x128xf32, #tpu.memory_space<vmem>>, vector<1x8x16x128xf32>,
    return
  }
  func.func @transform_0(%arg0: i32, %arg1: i32) -> (i32, i32, i32, i32) {
    %c0_i32 = arith.constant 0 : i32
    %c0_i32_0 = arith.constant 0 : i32
    %c0_i32_1 = arith.constant 0 : i32
    %c0_i32_2 = arith.constant 0 : i32
    return %arg0, %c0_i32, %c0_i32_0, %c0_i32_1 : i32, i32, i32, i32
  }
  func.func @transform_1(%arg0: i32, %arg1: i32) -> (i32, i32, i32) {
    %c0_i32 = arith.constant 0 : i32
    %c0_i32_0 = arith.constant 0 : i32
    %c0_i32_1 = arith.constant 0 : i32
    %c0_i32_2 = arith.constant 0 : i32
    return %c0_i32, %c0_i32_0, %c0_i32_1 : i32, i32, i32
  }
  func.func @transform_2(%arg0: i32, %arg1: i32) -> (i32, i32) {
    %c0_i32 = arith.constant 0 : i32
    %c0_i32_0 = arith.constant 0 : i32
    %c0_i32_1 = arith.constant 0 : i32
    return %c0_i32, %c0_i32_0 : i32, i32
  }
  func.func @transform_3(%arg0: i32, %arg1: i32) -> (i32, i32) {
    %c0_i32 = arith.constant 0 : i32
    %c0_i32_0 = arith.constant 0 : i32
    %c0_i32_1 = arith.constant 0 : i32
    return %c0_i32, %c0_i32_0 : i32, i32
  }
  func.func @transform_4(%arg0: i32, %arg1: i32) -> (i32, i32) {
    %c0_i32 = arith.constant 0 : i32
    %c0_i32_0 = arith.constant 0 : i32
    %c0_i32_1 = arith.constant 0 : i32
    return %c0_i32, %c0_i32_0 : i32, i32
  }
  func.func @transform_5(%arg0: i32, %arg1: i32) -> (i32, i32) {
    %c0_i32 = arith.constant 0 : i32
    %c0_i32_0 = arith.constant 0 : i32
    %c0_i32_1 = arith.constant 0 : i32
    return %c0_i32, %c0_i32_0 : i32, i32
  }
  func.func @transform_6(%arg0: i32, %arg1: i32) -> (i32, i32) {
    %c0_i32 = arith.constant 0 : i32
    %c0_i32_0 = arith.constant 0 : i32
    %c0_i32_1 = arith.constant 0 : i32
    return %c0_i32, %c0_i32_0 : i32, i32
  }
  func.func @transform_7(%arg0: i32, %arg1: i32) -> (i32, i32, i32, i32) {
    %c0_i32 = arith.constant 0 : i32
    %c0_i32_0 = arith.constant 0 : i32
    %c0_i32_1 = arith.constant 0 : i32
    return %arg0, %arg1, %c0_i32, %c0_i32_0 : i32, i32, i32, i32
  }
  func.func @transform_8(%arg0: i32, %arg1: i32) -> (i32, i32, i32, i32) {
    %c0_i32 = arith.constant 0 : i32
    %c0_i32_0 = arith.constant 0 : i32
    %c0_i32_1 = arith.constant 0 : i32
    return %arg0, %arg1, %c0_i32, %c0_i32_0 : i32, i32, i32, i32
  }
}

</mosaic_0001>

<bundles_post_ra>
// kernel: tpu_custom_call.1
= control target key start
LH: loop header
LB: loop body
LE: loop exit
PB: predicated region body
PF: predicated region fallthrough
CT: control target
= control target key end

     0   :  { %s5847_s0 = inlined_call_operand.hbm [shape: f32[2,16,16,128], index: 0, kind: input, shape index: {}]   ;;  %s5848_s1 = inlined_call_operand.hbm [shape: bf16[3,384,128], index: 1, kind: input, shape index: {}]   ;;  %s5849_s2 = inlined_call_operand.vmem [shape: f32[1,128], index: 2, kind: input, shape index: {}]   ;;  %s5850_s3 = inlined_call_operand.vmem [shape: f32[1,128], index: 3, kind: input, shape index: {}]   ;;  %s5851_s4 = inlined_call_operand.vmem [shape: f32[1,128], index: 4, kind: input, shape index: {}]   ;;  %s5852_s5 = inlined_call_operand.hbm [shape: bf16[128,128], index: 5, kind: input, shape index: {}]   ;;  %s5853_s6 = inlined_call_operand.vmem [shape: f32[1,128], index: 6, kind: input, shape index: {}]   ;;  %s5854_s7 = inlined_call_operand.hbm [shape: bf16[2,16,16,128], index: 7, kind: output, shape index: {0}]   ;;  %s5855_s8 = inlined_call_operand.hbm [shape: f32[2,16,16,128], index: 8, kind: output, shape index: {1}]  }
   0x1   :  { %5867 = sst [smem:[#allocation22_spill]] %s5848_s1 }
   0x2   :  { %5868 = sst [smem:[#allocation23_spill]] %s5851_s4 }
   0x3   :  { %5869 = sst [smem:[#allocation24_spill]] %s5852_s5 }
   0x4   :  { %5870 = sst [smem:[#allocation25_spill]] %s5853_s6 }
   0x5   :  { %5871 = sst [smem:[#allocation26_spill]] %s5854_s7 }
   0x6   :  { %5872 = sst [smem:[#allocation27_spill]] %s5855_s8 }
   0x7   :  { %14 = vsyncpa [#allocation4], 0 }
   0x8   :  { %16 = vsyncpa [#allocation4 + $0x1], 0 }
   0x9   :  { %17 = vsyncpa [#allocation7], 0 }
   0xa   :  { %18 = vsyncpa [#allocation5], 0 }
   0xb   :  { %20 = vsyncpa [#allocation5 + $0x1], 0 }
   0xc   :  { %21 = vsyncpa [#allocation11], 0 }
   0xd   :  { %23 = vsyncpa [#allocation11 + $0x1], 0  ;;  %s4821_s27 = smov 0   ;;  %s4823_s28 = smov 0  }
   0xe   :  { %s4825_s29 = smov 0   ;;  %s4827_s30 = smov 0  }
   0xf   :  { %s4829_s9 = smov 0   ;;  %s4831_s10 = smov 0  }
  0x10   :  { %s4833_s11 = smov 0   ;;  %s4835_s12 = smov 0  }
  0x11   :  { %s4837_s13 = smov 0   ;;  %s4839_s14 = smov 0  }
  0x12   :  { %s4841_s15 = smov 0  }
  0x13 LB: > { %5873 = sst [smem:[#allocation16_spill]] %s4720_s27  ;;  %s3513_s16 = sadd.s32 4294967295, %s4760_s15   ;;  %s4760_s15 = sphi %s4841_s15, %s29_s15   ;;  %s4756_s14 = sphi %s4839_s14, %s5919_s14   ;;  %s4752_s13 = sphi %s4837_s13, %s5918_s13   ;;  %s4748_s12 = sphi %s4835_s12, %s5917_s12   ;;  %s4744_s11 = sphi %s4833_s11, %s5909_s11   ;;  %s4740_s10 = sphi %s4831_s10, %s5916_s10   ;;  %s4736_s9 = sphi %s4829_s9, %s5915_s9   ;;  %s4732_s30 = sphi %s4827_s30, %s5914_s30   ;;  %s4728_s29 = sphi %s4825_s29, %s5913_s29   ;;  %s4724_s28 = sphi %s4823_s28, %s5912_s28   ;;  %s4720_s27 = sphi %s4821_s27, %s5911_s27  }
  0x14   : > { %5874 = sst [smem:[#allocation17_spill]] %s4748_s12  ;;  %s3514_s17 = sadd.s32 4294967294, %s4760_s15  }
  0x15   : > { %5875 = sst [smem:[#allocation18_spill]] %s4752_s13  ;;  %p61_p0 = scmp.ne.s32.totalorder %s4736_s9, %s4732_s30 }
  0x16   : > { %p4877_p1 = scmp.eq.s32.totalorder %s3513_s16, 0  ;;  %p212_p2 = scmp.ne.s32.totalorder %s4728_s29, %s4724_s28 }
  0x17   : > { %p213_p4 = scmp.eq.s32.totalorder %s3513_s16, 3  ;;  %p218_p5 = scmp.ne.s32.totalorder %s4724_s28, %s4720_s27 }
  0x18   : > { %s5876_s18 = scalar_select %p4877_p1, 1, 0 }
  0x19   : > { %p4886_p3 = por %p4877_p1, %p61_p0  ;;  %p219_p6 = scmp.eq.s32.totalorder %s3514_s17, 3 }
  0x1a   : > { %p4892_p7 = por %p213_p4, %p212_p2  ;;  %p3515_p8 = scmp.ge.s32.totalorder %s4760_s15, 1 }
  0x1b   : > { %p4897_p9 = por %p219_p6, %p218_p5  ;;  %p254_p10 = scmp.lt.s32.totalorder %s4760_s15, 5 }
  0x1c   : > { %s5878_s21 = scalar_select %p4892_p7, 1, 0 }
  0x1d   : > { %s5880_s22 = scalar_select %p4897_p9, 1, 0 }
  0x1e   : > { %5879 = sst [smem:[#allocation19_spill]] %s5878_s21  ;;  %p4902_p11 = pnand %p3515_p8, %p254_p10 }
  0x1f   : > { %5881 = sst [smem:[#allocation20_spill]] %s5880_s22  ;;  %s4762_s24 = smov [#allocation6]  }
  0x20   : > { %s266_s25 = sshll.u32 %s4762_s24, 4  ;;  %p4275_p12 = pneg %p4902_p11  ;;  %s267_s25 = int_to_ptr.vmem [resolvable:$true] %s266_s25 }
  0x21   : > { %s4763_s30 = smov [#allocation8]   ;;  %s4537_s17 = scalar_lea.vmem %s267_s25, 9216 }
  0x22   : > { %p4910_p13 = pnand %p4275_p12, %p4877_p1  ;;  %s288_s16 = sshll.u32 %s4763_s30, 4  ;;  %s289_s16 = int_to_ptr.vmem [resolvable:$true] %s288_s16 }
  0x23   : > { %p4538_p2 = scmp.ne.s32.totalorder %s267_s25, %s4537_s17  ;;  %p4545_p6 = scmp.lt.s32.totalorder %s267_s25, %s267_s25 }
  0x24   : > { %p4528_p0 = pneg %p4910_p13  ;;  %p4546_p8 = scmp.lt.s32.totalorder %s4537_s17, %s4537_s17 }
  0x26   : > { %p4540_p4 = pnand %p4538_p2, %p4528_p0  ;;  %p4547_p10 = por %p4546_p8, %p4545_p6 }
  0x28   : > { %p4541_p5 = pneg %p4540_p4 }
  0x2a   : > { %p4548_p12 = pnand %p4547_p10, %p4541_p5 }
  0x2c   : > { %4551 = shalt.err (!%p4548_p12)
}
  0x2d   : > { %s4764_s24 = smov 64   ;;  %s4765_s19 = smov 4  }
  0x2e   : > { %s5884_s1 = sld [smem:[#allocation22_spill]]  ;;  %s4563_s27 = scalar_lea.vmem %s289_s16, 1024 }
  0x2f   : > { %p4564_p9 = scmp.ne.s32.totalorder %s289_s16, %s4563_s27  ;;  %p4571_p7 = scmp.lt.s32.totalorder %s289_s16, %s289_s16 }
  0x30   : > { %p4572_p1 = scmp.lt.s32.totalorder %s4563_s27, %s4563_s27 }
  0x31   : > { %p4566_p2 = pnand %p4564_p9, %p4528_p0 }
  0x32   : > { %p4573_p6 = por %p4572_p1, %p4571_p7 }
  0x33   : > { %p4567_p4 = pneg %p4566_p2 }
  0x34   : > { %4278 = dma.hbm_to_vmem [thread:$0]  (!%p4910_p13), %s5884_s1, 9216, %s267_s25, [#allocation7], %s4764_s24, %s4764_s24, %s4765_s19  }
  0x35   : > { %p4574_p5 = pnand %p4573_p6, %p4567_p4 }
  0x37   : > { %4577 = shalt.err (!%p4574_p5)
}
  0x38   : > { %s5885_s5 = sld [smem:[#allocation24_spill]]  ;;  %s38_s27 = sadd.s32 1, %s4752_s13 }
  0x39   : > { %s41_s22 = sadd.s32 1, %s4756_s14  ;;  %p39_p1 = scmp.ge.s32.totalorder %s38_s27, 2 }
  0x3a   : > { %s48_s25 = sadd.s32 1, %s4740_s10  ;;  %p55_p7 = scmp.ne.s32.totalorder %s4740_s10, %s4736_s9 }
  0x3b   : > { %p56_p9 = scmp.eq.s32.totalorder %s4760_s15, 0  ;;  %s5921_s27 = smov (%p39_p1, %s38_s27), 0 }
  0x3c   : > { %5886 = sst [smem:[#allocation21_spill]] %s5921_s27  ;;  %s5923_s22 = smov (!%p39_p1, %s41_s22), %s4756_s14 }
  0x3d   : > { %p4941_p0 = por %p56_p9, %p55_p7  ;;  %s198_s26 = ssub.s32 %s4752_s13, %s5921_s27 }
  0x3e   : > { %4281 = dma.hbm_to_vmem [thread:$0]  (!%p4910_p13), %s5885_s5, 1024, %s289_s16, [#allocation7], %s4764_s24, %s4764_s24, %s4765_s19  }
  0x3f   : > { %p43_p13 = scmp.ge.s32.totalorder %s5923_s22, 2  ;;  %p4295_p8 = scmp.lt.s32.totalorder %s4760_s15, 4 }
  0x40   : > { %s305_s19 = sand.u32 1, %s4740_s10   ;;  %s3777_s16 = sshll.u32 %s4756_s14, 12 }
  0x41   : > { %s5925_s22 = smov (%p43_p13, %s5923_s22), 0  ;;  %s3519_s24 = sshll.u32 %s305_s19, 8 }
  0x42   : > { %s45_s30 = ssub.s32 %s4756_s14, %s5925_s22  ;;  %s315_s8 = scalar_lea.hbm %s5847_s0, %s3777_s16 }
  0x43   : > { %p46_p10 = scmp.eq.s32.totalorder %s45_s30, 0  ;;  %s199_s17 = sor.u32 %s198_s26, %s45_s30 }
  0x44   : > { %p200_p12 = scmp.eq.s32.totalorder %s199_s17, 0  ;;  %s5888_s27 = sadd.s32 1, %s4728_s29 }
  0x45   : > { %s4958_s21 = scalar_select %p46_p10, %s4740_s10, %s48_s25  }
  0x46   : > { %s4963_s13 = scalar_select %p200_p12, %s4728_s29, %s5888_s27  }
  0x47   : > { %s309_s12 = scalar_lea.vmem [#allocation3], %s3519_s24  ;;  %p4969_p2 = pnand %p4295_p8, %p4941_p0 }
  0x48   : > { %s316_s6 = sshll.u32 %s309_s12, 4  ;;  %s306_s26 = scalar_lea.sflag [#allocation4], %s305_s19  ;;  %s317_s6 = int_to_ptr.vmem [resolvable:$true] %s316_s6 }
  0x49   : > { %p4580_p4 = pneg %p4969_p2  ;;  %s4591_s1 = scalar_lea.vmem %s317_s6, 4096 }
  0x4a   : > { %p4592_p6 = scmp.ne.s32.totalorder %s317_s6, %s4591_s1  ;;  %s4766_s5 = smov [#allocation3]  }
  0x4b   : > { %s4596_s27 = sshll.u32 %s4766_s5, 4  ;;  %s4597_s27 = int_to_ptr.vmem [resolvable:$false] %s4596_s27 }
  0x4c   : > { %p4594_p5 = pnand %p4592_p6, %p4580_p4  ;;  %s4598_s25 = scalar_lea.vmem %s4597_s27, 8192 }
  0x4d   : > { %p4599_p7 = scmp.lt.s32.totalorder %s317_s6, %s4597_s27  ;;  %p4600_p9 = scmp.lt.s32.totalorder %s4598_s25, %s4591_s1 }
  0x4e   : > { %p4595_p1 = pneg %p4594_p5 }
  0x4f   : > { %p4601_p13 = por %p4600_p9, %p4599_p7 }
  0x51   : > { %p4602_p0 = pnand %p4601_p13, %p4595_p1 }
  0x53   : > { %4605 = shalt.err (!%p4602_p0)
}
  0x54   : > { %s4767_s12 = smov 128   ;;  %s4768_s7 = smov 8  }
  0x55   : > { %4285 = dma.hbm_to_vmem [thread:$0]  (!%p4969_p2), %s315_s8, 4096, %s317_s6, %s306_s26, %s4767_s12, %s4767_s12, %s4768_s7  }
  0x56   : > { %328 = sbr.rel (%p4902_p11) target bundleno = 636 (0x27c), region = 48  ;;  %s330_s19 = sand.u32 (!%p4902_p11), 1, %s4736_s9  }
  0x57   : > { %s3523_s16 = sshll.u32 (!%p4902_p11), %s330_s19, 8  ;;  %s331_s24 = scalar_lea.sflag (!%p4902_p11), [#allocation4], %s330_s19 }
  0x58   : > { %s4980_s30 = scalar_lea.vmem (!%p4902_p11), [#allocation3], %s3523_s16 }
  0x5b   : > { %4703 = dma.done.wait (%p4886_p3), %s331_s24, 4096  }
  0x5c   : > { %4705 = vsyncadd (%p4886_p3), %s331_s24, 4294963200  ;;  %p5890_p8 = scmp.ne.s32.totalorder %s5876_s18, 0 }
  0x5e   : > { %4707 = dma.done.wait (%p5890_p8), [#allocation7], 10240  }
  0x5f   : > { %4709 = vsyncadd (%p5890_p8), [#allocation7], 4294957056  ;;  %s4991_s4 = sand.u32 1, %s4724_s28   ;;  %p3528_p11 = scmp.ne.s32.totalorder %s4744_s11, 0 }
  0x60   : > { %s3526_s6 = sshll.u32 %s4991_s4, 6  ;;  %s3527_s8 = sshll.u32 %s4991_s4, 7 }
  0x61   : > { %s4995_s23 = scalar_lea.vmem [#allocation9], %s3526_s6  ;;  %s4997_s17 = scalar_lea.vmem [#allocation10], %s3527_s8 }
  0x62   : > { %386 = sbr.rel (%p3528_p11) target bundleno = 207 (0xcf), region = 64 }
  0x67   : > { %v441_v0 = vld [vmem:[%s4980_s30] sm:$0xff]  ;;  %v5004_v1 = vld [vmem:[%s5849_s2] ss:$0 sm:$0xff]  ;;  %v4769_v3 = vmov 0   ;;  %vm1003_vm0 = vcmask 1043456   ;;  %v443_v7 = vld [vmem:[%s4980_s30 + $0x10] sm:$0xff] }
  0x68   : > { %v5009_v2 = vld [vmem:[%s5850_s3] ss:$0 sm:$0xff]  ;;  %390 = vst [vmem:[#allocation2 + $0xc] sm:$0xf] %v4769_v3  ;;  %387 = vst [vmem:[#allocation2] sm:$0xf] %v4769_v3  ;;  %v480_v4 = vmul.f32 %v5004_v1, %v441_v0  ;;  %v482_v10 = vmul.f32 %v5004_v1, %v443_v7 }
  0x69   : > { %388 = vst [vmem:[#allocation2 + $0x4] sm:$0xf] %v4769_v3  ;;  %389 = vst [vmem:[#allocation2 + $0x8] sm:$0x1] %v4769_v3  ;;  %v442_v5 = vld [vmem:[%s4980_s30 + $0x8] sm:$0xff]  ;;  %v444_v8 = vld [vmem:[%s4980_s30 + $0x18] sm:$0xff] }
  0x6a   : > { %391 = vst [vmem:[#allocation2 + $0x10] sm:$0xf] %v4769_v3  ;;  %392 = vst [vmem:[#allocation2 + $0x14] sm:$0x1] %v4769_v3  ;;  %vm1004_vm1 = vsmask.f32 7938  ;;  %v481_v6 = vmul.f32 %v5004_v1, %v442_v5  ;;  %v519_v9 = vadd.f32 %v5009_v2, %v480_v4  ;;  %v483_v11 = vmul.f32 %v5004_v1, %v444_v8 }
  0x6b   : > { %393 = vst [vmem:[#allocation2 + $0x18] sm:$0xf] %v4769_v3  ;;  %394 = vst [vmem:[#allocation2 + $0x1c] sm:$0xf] %v4769_v3  ;;  %vm679_vm2 = vsmask.f32 256  ;;  %v521_v20 = vadd.f32 %v5009_v2, %v482_v10 }
  0x6c   : > { %395 = vst [vmem:[#allocation2 + $0x20] sm:$0x1] %v4769_v3  ;;  %396 = vst [vmem:[#allocation2 + $0x24] sm:$0xf] %v4769_v3  ;;  %vm680_vm3 = vsmask.f32 4368  ;;  %v520_v14 = vadd.f32 %v5009_v2, %v481_v6  ;;  %v522_v21 = vadd.f32 %v5009_v2, %v483_v11 }
  0x6d   : > { %397 = vst [vmem:[#allocation2 + $0x28] sm:$0xf] %v4769_v3  ;;  %398 = vst [vmem:[#allocation2 + $0x2c] sm:$0x1] %v4769_v3  ;;  %v445_v12 = vld [vmem:[%s4980_s30 + $0x20] sm:$0xff]  ;;  %v446_v13 = vld [vmem:[%s4980_s30 + $0x28] sm:$0xff] }
  0x6e   : > { %399 = vst [vmem:[#allocation2 + $0x30] sm:$0xf] %v4769_v3  ;;  %400 = vst [vmem:[#allocation2 + $0x34] sm:$0xf] %v4769_v3  ;;  %vm1010_vm4 = vcmask 1040384   ;;  %v484_v15 = vmul.f32 %v5004_v1, %v445_v12  ;;  %v485_v16 = vmul.f32 %v5004_v1, %v446_v13  ;;  %v447_v17 = vld [vmem:[%s4980_s30 + $0x30] sm:$0xff] }
  0x6f   : > { %401 = vst [vmem:[#allocation2 + $0x38] sm:$0x1] %v4769_v3  ;;  %402 = vst [vmem:[#allocation2 + $0x3c] sm:$0xf] %v4769_v3  ;;  %v448_v18 = vld [vmem:[%s4980_s30 + $0x38] sm:$0xff]  ;;  %v551_v19 = vmax.f32 %v519_v9, 0.0  ;;  %v486_v22 = vmul.f32 %v5004_v1, %v447_v17 }
  0x70   : > { %403 = vst [vmem:[#allocation2 + $0x40] sm:$0xf] %v4769_v3  ;;  %404 = vst [vmem:[#allocation2 + $0x44] sm:$0x1] %v4769_v3  ;;  %v449_v23 = vld [vmem:[%s4980_s30 + $0x40] sm:$0xff]  ;;  %v450_v24 = vld [vmem:[%s4980_s30 + $0x48] sm:$0xff]  ;;  %v523_v26 = vadd.f32 %v5009_v2, %v484_v15  ;;  %v524_v27 = vadd.f32 %v5009_v2, %v485_v16  ;;  %v487_v28 = vmul.f32 %v5004_v1, %v448_v18 }
  0x71   : > { %405 = vst [vmem:[#allocation2 + $0x48] sm:$0xf] %v4769_v3  ;;  %406 = vst [vmem:[#allocation2 + $0x4c] sm:$0xf] %v4769_v3  ;;  %v552_v25 = vmax.f32 %v520_v14, 0.0  ;;  %v3778_v29 = vpack.c.bf16 %v551_v19, %v551_v19  ;;  %v553_v30 = vmax.f32 %v521_v20, 0.0  ;;  %v5035_v32 = vadd.f32 %v5009_v2, %v486_v22 }
  0x72   : > { %407 = vst [vmem:[#allocation2 + $0x50] sm:$0x1] %v4769_v3  ;;  %408 = vst [vmem:[#allocation2 + $0x54] sm:$0xf] %v4769_v3  ;;  %v554_v31 = vmax.f32 %v522_v21, 0.0  ;;  %v5038_v34 = vadd.f32 %v5009_v2, %v487_v28  ;;  %v488_v35 = vmul.f32 %v5004_v1, %v449_v23  ;;  %v489_v36 = vmul.f32 %v5004_v1, %v450_v24  ;;  %v451_v19 = vld [vmem:[%s4980_s30 + $0x50] sm:$0xff] }
  0x73   : > { %409 = vst [vmem:[#allocation2 + $0x58] sm:$0xf] %v4769_v3  ;;  %410 = vst [vmem:[#allocation2 + $0x5c] sm:$0x1] %v4769_v3  ;;  %v3779_v33 = vpack.c.bf16 %v552_v25, %v552_v25  ;;  %v683_v37 = vshrl.u32 %v3778_v29, 16  ;;  %v686_v38 = vshll.u32 %v3778_v29, 16  ;;  %v3780_v39 = vpack.c.bf16 %v553_v30, %v553_v30 }
  0x74   : > { %411 = vst [vmem:[#allocation2 + $0x60] sm:$0xf] %v4769_v3  ;;  %412 = vst [vmem:[#allocation2 + $0x64] sm:$0xf] %v4769_v3  ;;  %v3781_v40 = vpack.c.bf16 %v554_v31, %v554_v31  ;;  %v555_v43 = vmax.f32 %v523_v26, 0.0  ;;  %v556_v44 = vmax.f32 %v524_v27, 0.0  ;;  %v527_v27 = vadd.f32 %v5009_v2, %v488_v35 }
  0x75   : > { %413 = vst [vmem:[#allocation2 + $0x68] sm:$0x1] %v4769_v3  ;;  %414 = vst [vmem:[#allocation2 + $0x6c] sm:$0xf] %v4769_v3  ;;  %v691_v41 = vshrl.u32 %v3779_v33, 16  ;;  %v694_v42 = vshll.u32 %v3779_v33, 16  ;;  %v528_v28 = vadd.f32 %v5009_v2, %v489_v36  ;;  %v490_v33 = vmul.f32 %v5004_v1, %v451_v19 }
  0x76   : > { %415 = vst [vmem:[#allocation2 + $0x70] sm:$0xf] %v4769_v3  ;;  %416 = vst [vmem:[#allocation2 + $0x74] sm:$0x1] %v4769_v3  ;;  %v685_v45 = vrot.slane %v683_v37, 7  ;;  %v700_v47 = vshrl.u32 %v3780_v39, 16  ;;  %v3782_v54 = vpack.c.bf16 %v555_v43, %v555_v43  ;;  %v3783_v55 = vpack.c.bf16 %v556_v44, %v556_v44 }
  0x77   : > { %417 = vst [vmem:[#allocation2 + $0x78] sm:$0xf] %v4769_v3  ;;  %418 = vst [vmem:[#allocation2 + $0x7c] sm:$0xf] %v4769_v3  ;;  %v703_v48 = vshll.u32 %v3780_v39, 16  ;;  %v708_v49 = vshrl.u32 %v3781_v40, 16  ;;  %v529_v36 = vadd.f32 %v5009_v2, %v490_v33 }
  0x78   : > { %419 = vst [vmem:[#allocation2 + $0x80] sm:$0x1] %v4769_v3  ;;  %420 = vst [vmem:[#allocation2 + $0x84] sm:$0xf] %v4769_v3  ;;  %v1006_v50 = vld [vmem:[#allocation2 + $0xc] sm:$0xf]  ;;  %v688_v56 = vor.u32 %v686_v38, %v685_v45 }
  0x79   : > { %421 = vst [vmem:[#allocation2 + $0x88] sm:$0xf] %v4769_v3  ;;  %422 = vst [vmem:[#allocation2 + $0x8c] sm:$0x1] %v4769_v3  ;;  %v693_v52 = vrot.slane %v691_v41, 7  ;;  %v711_v53 = vshll.u32 %v3781_v40, 16 }
  0x7a   : > { %423 = vst [vmem:[#allocation2 + $0x90] sm:$0xf] %v4769_v3  ;;  %424 = vst [vmem:[#allocation2 + $0x94] sm:$0xf] %v4769_v3  ;;  %v689_v57 = vrot.slane %v685_v45, 4  ;;  %v702_v60 = vrot.slane %v700_v47, 7 }
  0x7b   : > { %425 = vst [vmem:[#allocation2 + $0x98] sm:$0x1] %v4769_v3  ;;  %426 = vst [vmem:[#allocation2 + $0x9c] sm:$0xf] %v4769_v3  ;;  %v1012_v59 = vld [vmem:[#allocation2 + $0x14] sm:$0x1]  ;;  %v696_v62 = vor.u32 %v694_v42, %v693_v52 }
  0x7c   : > { %427 = vst [vmem:[#allocation2 + $0xa0] sm:$0xf] %v4769_v3  ;;  %428 = vst [vmem:[#allocation2 + $0xa4] sm:$0x1] %v4769_v3  ;;  %v710_v61 = vrot.slane %v708_v49, 7  ;;  %v698_v63 = vrot.slane %v693_v52, 4  ;;  %v705_v6 = vor.u32 %v703_v48, %v702_v60 }
  0x7d   : > { %429 = vst [vmem:[#allocation2 + $0xa8] sm:$0xf] %v4769_v3  ;;  %430 = vst [vmem:[#allocation2 + $0xac] sm:$0xf] %v4769_v3  ;;  %v1015_v0 = vld [vmem:[#allocation2 + $0x18] sm:$0xf] }
  0x7e   : > { %431 = vst [vmem:[#allocation2 + $0xb0] sm:$0x1] %v4769_v3  ;;  %432 = vst [vmem:[#allocation2 + $0xb4] sm:$0xf] %v4769_v3  ;;  %v720_v4 = vshll.u32 %v3782_v54, 16  ;;  %v706_v7 = vrot.slane %v702_v60, 4  ;;  %v713_v8 = vor.u32 %v711_v53, %v710_v61 }
  0x7f   : > { %433 = vst [vmem:[#allocation2 + $0xb8] sm:$0xf] %v4769_v3  ;;  %434 = vst [vmem:[#allocation2 + $0xbc] sm:$0x1] %v4769_v3  ;;  %v1019_v9 = vld [vmem:[#allocation2 + $0x20] sm:$0x1] }
  0x80   : > { %435 = vst [vmem:[#allocation2 + $0xc0] sm:$0xf] %v4769_v3  ;;  %436 = vst [vmem:[#allocation2 + $0xc4] sm:$0xf] %v4769_v3  ;;  %v715_v12 = vrot.slane %v710_v61, 4  ;;  %v725_v17 = vshrl.u32 %v3783_v55, 16 }
  0x81   : > { %437 = vst [vmem:[#allocation2 + $0xc8] sm:$0x1] %v4769_v3  ;;  %438 = vst [vmem:[#allocation2 + $0xcc] sm:$0xf] %v4769_v3  ;;  %v1022_v16 = vld [vmem:[#allocation2 + $0x24] sm:$0xf] }
  0x82   : > { %439 = vst [vmem:[#allocation2 + $0xd0] sm:$0xf] %v4769_v3  ;;  %440 = vst [vmem:[#allocation2 + $0xd4] sm:$0x1] %v4769_v3  ;;  %v717_v3 = vshrl.u32 %v3782_v54, 16  ;;  %v728_v18 = vshll.u32 %v3783_v55, 16 }
  0x83   : > { %vm5044_vm5 = vmand %vm1003_vm0, %vm1004_vm1  ;;  %v452_v20 = vld [vmem:[%s4980_s30 + $0x58] sm:$0xff]  ;;  %v557_v24 = vmax.f32 %v5035_v32, 0.0  ;;  %v727_v25 = vrot.slane %v725_v17, 7  ;;  %v558_v26 = vmax.f32 %v5038_v34, 0.0  ;;  %v1026_v30 = vld [vmem:[#allocation2 + $0x2c] sm:$0x1] }
  0x84   : > { %vm5050_vm6 = vmor %vm679_vm2, %vm680_vm3  ;;  %v1007_v5 = vsel %vm5044_vm5, %v688_v56, %v1006_v50  ;;  %v719_v13 = vrot.slane %v717_v3, 7  ;;  %v1016_v14 = vsel %vm5044_vm5, %v705_v6, %v1015_v0  ;;  %v491_v37 = vmul.f32 %v5004_v1, %v452_v20  ;;  %v453_v42 = vld [vmem:[%s4980_s30 + $0x60] sm:$0xff]  ;;  %v454_v43 = vld [vmem:[%s4980_s30 + $0x68] sm:$0xff] }
  0x85   : > { %vm5056_vm7 = vmand %vm1010_vm4, %vm679_vm2  ;;  %1008 = vst [vmem:[#allocation2 + $0xc] sm:$0xf] %v1007_v5  ;;  %v697_v10 = vsel %vm5050_vm6, %v689_v57, %v696_v62  ;;  %v714_v15 = vsel %vm5050_vm6, %v706_v7, %v713_v8  ;;  %v3784_v31 = vpack.c.bf16 %v557_v24, %v557_v24  ;;  %v730_v32 = vor.u32 %v728_v18, %v727_v25  ;;  %v1029_v54 = vld [vmem:[#allocation2 + $0x30] sm:$0xf]  ;;  %v1033_v62 = vld [vmem:[#allocation2 + $0x38] sm:$0x1] }
  0x86   : > { %v1013_v11 = vsel %vm5056_vm7, %v698_v63, %v1012_v59  ;;  %1009 = vst [vmem:[#allocation2 + $0x10] sm:$0xf] %v697_v10  ;;  %1017 = vst [vmem:[#allocation2 + $0x18] sm:$0xf] %v1016_v14  ;;  %v1020_v21 = vsel %vm5056_vm7, %v715_v12, %v1019_v9  ;;  %v722_v22 = vor.u32 %v720_v4, %v719_v13  ;;  %v723_v23 = vrot.slane %v719_v13, 4 }
  0x87   : > { %1014 = vst [vmem:[#allocation2 + $0x14] sm:$0x1] %v1013_v11  ;;  %1018 = vst [vmem:[#allocation2 + $0x1c] sm:$0xf] %v714_v15  ;;  %v732_v38 = vrot.slane %v727_v25, 4  ;;  %v3785_v39 = vpack.c.bf16 %v558_v26, %v558_v26  ;;  %v559_v34 = vmax.f32 %v527_v27, 0.0  ;;  %v530_v56 = vadd.f32 %v5009_v2, %v491_v37 }
  0x88   : > { %1021 = vst [vmem:[#allocation2 + $0x20] sm:$0x1] %v1020_v21  ;;  %v1023_v29 = vsel %vm5044_vm5, %v722_v22, %v1022_v16  ;;  %v734_v40 = vshrl.u32 %v3784_v31, 16  ;;  %v737_v35 = vshll.u32 %v3784_v31, 16  ;;  %v560_v41 = vmax.f32 %v528_v28, 0.0  ;;  %v455_v16 = vld [vmem:[%s4980_s30 + $0x70] sm:$0xff] }
  0x89   : > { %1024 = vst [vmem:[#allocation2 + $0x24] sm:$0xf] %v1023_v29  ;;  %v731_v44 = vsel %vm5050_vm6, %v723_v23, %v730_v32  ;;  %v1027_v45 = vsel %vm5056_vm7, %v732_v38, %v1026_v30  ;;  %v742_v47 = vshrl.u32 %v3785_v39, 16  ;;  %v745_v48 = vshll.u32 %v3785_v39, 16  ;;  %v1036_v13 = vld [vmem:[#allocation2 + $0x3c] sm:$0xf] }
  0x8a   : > { %1025 = vst [vmem:[#allocation2 + $0x28] sm:$0xf] %v731_v44  ;;  %1028 = vst [vmem:[#allocation2 + $0x2c] sm:$0x1] %v1027_v45  ;;  %v736_v49 = vrot.slane %v734_v40, 7  ;;  %v3786_v50 = vpack.c.bf16 %v559_v34, %v559_v34  ;;  %v3787_v52 = vpack.c.bf16 %v560_v41, %v560_v41  ;;  %v561_v53 = vmax.f32 %v529_v36, 0.0 }
  0x8b   : > { %v744_v55 = vrot.slane %v742_v47, 7  ;;  %v492_v57 = vmul.f32 %v5004_v1, %v453_v42  ;;  %v493_v59 = vmul.f32 %v5004_v1, %v454_v43  ;;  %v562_v10 = vmax.f32 %v530_v56, 0.0  ;;  %v1040_v19 = vld [vmem:[#allocation2 + $0x44] sm:$0x1]  ;;  %v456_v30 = vld [vmem:[%s4980_s30 + $0x78] sm:$0xff]  ;;  %v457_v31 = vld [vmem:[%s4980_s30 + $0x80] sm:$0xff] }
  0x8c   : > { %v739_v60 = vor.u32 %v737_v35, %v736_v49  ;;  %v740_v61 = vrot.slane %v736_v49, 4  ;;  %v751_v63 = vshrl.u32 %v3786_v50, 16  ;;  %v754_v0 = vshll.u32 %v3786_v50, 16  ;;  %v1043_v32 = vld [vmem:[#allocation2 + $0x48] sm:$0xf] }
  0x8d   : > { %v747_v3 = vor.u32 %v745_v48, %v744_v55  ;;  %v749_v4 = vrot.slane %v744_v55, 4  ;;  %v759_v5 = vshrl.u32 %v3787_v52, 16  ;;  %v762_v6 = vshll.u32 %v3787_v52, 16  ;;  %v1047_v47 = vld [vmem:[#allocation2 + $0x50] sm:$0x1] }
  0x8e   : > { %v1030_v7 = vsel %vm5044_vm5, %v739_v60, %v1029_v54  ;;  %v753_v8 = vrot.slane %v751_v63, 7  ;;  %v3788_v9 = vpack.c.bf16 %v561_v53, %v561_v53  ;;  %v531_v15 = vadd.f32 %v5009_v2, %v492_v57 }
  0x8f   : > { %1031 = vst [vmem:[#allocation2 + $0x30] sm:$0xf] %v1030_v7  ;;  %v748_v11 = vsel %vm5050_vm6, %v740_v61, %v747_v3  ;;  %v1034_v12 = vsel %vm5056_vm7, %v749_v4, %v1033_v62  ;;  %v761_v14 = vrot.slane %v759_v5, 7  ;;  %v3789_v24 = vpack.c.bf16 %v562_v10, %v562_v10  ;;  %v458_v61 = vld [vmem:[%s4980_s30 + $0x88] sm:$0xff] }
  0x90   : > { %1032 = vst [vmem:[#allocation2 + $0x34] sm:$0xf] %v748_v11  ;;  %1035 = vst [vmem:[#allocation2 + $0x38] sm:$0x1] %v1034_v12  ;;  %v756_v17 = vor.u32 %v754_v0, %v753_v8  ;;  %v757_v18 = vrot.slane %v753_v8, 4  ;;  %v768_v20 = vshrl.u32 %v3788_v9, 16  ;;  %v532_v28 = vadd.f32 %v5009_v2, %v493_v59 }
  0x91   : > { %v771_v21 = vshll.u32 %v3788_v9, 16  ;;  %v764_v22 = vor.u32 %v762_v6, %v761_v14  ;;  %v766_v23 = vrot.slane %v761_v14, 4  ;;  %v563_v25 = vmax.f32 %v531_v15, 0.0  ;;  %v1050_v0 = vld [vmem:[#allocation2 + $0x54] sm:$0xf] }
  0x92   : > { %v1037_v26 = vsel %vm5044_vm5, %v756_v17, %v1036_v13  ;;  %v770_v27 = vrot.slane %v768_v20, 7  ;;  %v494_v29 = vmul.f32 %v5004_v1, %v455_v16  ;;  %v776_v38 = vshrl.u32 %v3789_v24, 16  ;;  %v1054_v9 = vld [vmem:[#allocation2 + $0x5c] sm:$0x1] }
  0x93   : > { %1038 = vst [vmem:[#allocation2 + $0x3c] sm:$0xf] %v1037_v26  ;;  %v765_v33 = vsel %vm5050_vm6, %v757_v18, %v764_v22  ;;  %v1041_v37 = vsel %vm5056_vm7, %v766_v23, %v1040_v19  ;;  %v779_v39 = vshll.u32 %v3789_v24, 16  ;;  %v3790_v35 = vpack.c.bf16 %v563_v25, %v563_v25  ;;  %v459_v22 = vld [vmem:[%s4980_s30 + $0x90] sm:$0xff]  ;;  %v460_v23 = vld [vmem:[%s4980_s30 + $0x98] sm:$0xff]  ;;  %v461_v24 = vld [vmem:[%s4980_s30 + $0xa0] sm:$0xff] }
  0x94   : > { %1039 = vst [vmem:[#allocation2 + $0x40] sm:$0xf] %v765_v33  ;;  %1042 = vst [vmem:[#allocation2 + $0x44] sm:$0x1] %v1041_v37  ;;  %v773_v34 = vor.u32 %v771_v21, %v770_v27  ;;  %v774_v40 = vrot.slane %v770_v27, 4  ;;  %v564_v41 = vmax.f32 %v532_v28, 0.0  ;;  %v533_v42 = vadd.f32 %v5009_v2, %v494_v29 }
  0x95   : > { %v778_v36 = vrot.slane %v776_v38, 7  ;;  %v495_v43 = vmul.f32 %v5004_v1, %v456_v30  ;;  %v496_v44 = vmul.f32 %v5004_v1, %v457_v31  ;;  %v785_v48 = vshrl.u32 %v3790_v35, 16  ;;  %v1057_v27 = vld [vmem:[#allocation2 + $0x60] sm:$0xf] }
  0x96   : > { %v1044_v45 = vsel %vm5044_vm5, %v773_v34, %v1043_v32  ;;  %v788_v49 = vshll.u32 %v3790_v35, 16  ;;  %v3791_v50 = vpack.c.bf16 %v564_v41, %v564_v41  ;;  %v565_v54 = vmax.f32 %v533_v42, 0.0  ;;  %v1061_v32 = vld [vmem:[#allocation2 + $0x68] sm:$0x1]  ;;  %v1064_v42 = vld [vmem:[#allocation2 + $0x6c] sm:$0xf] }
  0x97   : > { %1045 = vst [vmem:[#allocation2 + $0x48] sm:$0xf] %v1044_v45  ;;  %v781_v52 = vor.u32 %v779_v39, %v778_v36  ;;  %v783_v53 = vrot.slane %v778_v36, 4  ;;  %v534_v55 = vadd.f32 %v5009_v2, %v495_v43  ;;  %v787_v56 = vrot.slane %v785_v48, 7 }
  0x98   : > { %v793_v57 = vshrl.u32 %v3791_v50, 16  ;;  %v796_v59 = vshll.u32 %v3791_v50, 16  ;;  %v535_v60 = vadd.f32 %v5009_v2, %v496_v44  ;;  %v3792_v3 = vpack.c.bf16 %v565_v54, %v565_v54  ;;  %v463_v50 = vld [vmem:[%s4980_s30 + $0xb0] sm:$0xff] }
  0x99   : > { %v782_v62 = vsel %vm5050_vm6, %v774_v40, %v781_v52  ;;  %v1048_v63 = vsel %vm5056_vm7, %v783_v53, %v1047_v47  ;;  %v566_v4 = vmax.f32 %v534_v55, 0.0  ;;  %v790_v5 = vor.u32 %v788_v49, %v787_v56  ;;  %v462_v49 = vld [vmem:[%s4980_s30 + $0xa8] sm:$0xff]  ;;  %v464_v52 = vld [vmem:[%s4980_s30 + $0xb8] sm:$0xff] }
  0x9a   : > { %1046 = vst [vmem:[#allocation2 + $0x4c] sm:$0xf] %v782_v62  ;;  %1049 = vst [vmem:[#allocation2 + $0x50] sm:$0x1] %v1048_v63  ;;  %v791_v6 = vrot.slane %v787_v56, 4  ;;  %v795_v7 = vrot.slane %v793_v57, 7  ;;  %v497_v13 = vmul.f32 %v5004_v1, %v458_v61  ;;  %v498_v39 = vmul.f32 %v5004_v1, %v459_v22 }
  0x9b   : > { %v567_v8 = vmax.f32 %v535_v60, 0.0  ;;  %v802_v10 = vshrl.u32 %v3792_v3, 16  ;;  %v805_v11 = vshll.u32 %v3792_v3, 16  ;;  %v3793_v12 = vpack.c.bf16 %v566_v4, %v566_v4  ;;  %v465_v57 = vld [vmem:[%s4980_s30 + $0xc0] sm:$0xff] }
  0x9c   : > { %v1051_v14 = vsel %vm5044_vm5, %v790_v5, %v1050_v0  ;;  %v798_v15 = vor.u32 %v796_v59, %v795_v7  ;;  %v800_v16 = vrot.slane %v795_v7, 4  ;;  %v536_v21 = vadd.f32 %v5009_v2, %v497_v13  ;;  %v1068_v5 = vld [vmem:[#allocation2 + $0x74] sm:$0x1] }
  0x9d   : > { %v3794_v17 = vpack.c.bf16 %v567_v8, %v567_v8  ;;  %1052 = vst [vmem:[#allocation2 + $0x54] sm:$0xf] %v1051_v14  ;;  %v804_v18 = vrot.slane %v802_v10, 7  ;;  %v810_v19 = vshrl.u32 %v3793_v12, 16  ;;  %v813_v20 = vshll.u32 %v3793_v12, 16 }
  0x9e   : > { %v799_v25 = vsel %vm5050_vm6, %v791_v6, %v798_v15  ;;  %v1055_v26 = vsel %vm5056_vm7, %v800_v16, %v1054_v9  ;;  %v568_v37 = vmax.f32 %v536_v21, 0.0  ;;  %v499_v34 = vmul.f32 %v5004_v1, %v460_v23 }
  0x9f   : > { %v819_v28 = vshrl.u32 %v3794_v17, 16  ;;  %v822_v29 = vshll.u32 %v3794_v17, 16  ;;  %1053 = vst [vmem:[#allocation2 + $0x58] sm:$0xf] %v799_v25  ;;  %1056 = vst [vmem:[#allocation2 + $0x5c] sm:$0x1] %v1055_v26  ;;  %v807_v30 = vor.u32 %v805_v11, %v804_v18  ;;  %v500_v40 = vmul.f32 %v5004_v1, %v461_v24 }
  0xa0   : > { %v808_v31 = vrot.slane %v804_v18, 4  ;;  %v812_v33 = vrot.slane %v810_v19, 7  ;;  %v3795_v43 = vpack.c.bf16 %v568_v37, %v568_v37  ;;  %v537_v47 = vadd.f32 %v5009_v2, %v498_v39  ;;  %v1071_v26 = vld [vmem:[#allocation2 + $0x78] sm:$0xf] }
  0xa1   : > { %v821_v38 = vrot.slane %v819_v28, 7  ;;  %v1058_v35 = vsel %vm5044_vm5, %v807_v30, %v1057_v27  ;;  %v538_v48 = vadd.f32 %v5009_v2, %v499_v34  ;;  %v539_v62 = vadd.f32 %v5009_v2, %v500_v40  ;;  %v1075_v27 = vld [vmem:[#allocation2 + $0x80] sm:$0x1] }
  0xa2   : > { %v815_v41 = vor.u32 %v813_v20, %v812_v33  ;;  %v817_v36 = vrot.slane %v812_v33, 4  ;;  %1059 = vst [vmem:[#allocation2 + $0x60] sm:$0xf] %v1058_v35  ;;  %v827_v55 = vshrl.u32 %v3795_v43, 16  ;;  %v830_v56 = vshll.u32 %v3795_v43, 16 }
  0xa3   : > { %v824_v44 = vor.u32 %v822_v29, %v821_v38  ;;  %v825_v45 = vrot.slane %v821_v38, 4  ;;  %v569_v60 = vmax.f32 %v537_v47, 0.0  ;;  %v570_v61 = vmax.f32 %v538_v48, 0.0 }
  0xa4   : > { %v816_v53 = vsel %vm5050_vm6, %v808_v31, %v815_v41  ;;  %v1062_v54 = vsel %vm5056_vm7, %v817_v36, %v1061_v32  ;;  %v829_v63 = vrot.slane %v827_v55, 7  ;;  %v501_v0 = vmul.f32 %v5004_v1, %v462_v49  ;;  %v466_v41 = vld [vmem:[%s4980_s30 + $0xc8] sm:$0xff] }
  0xa5   : > { %1060 = vst [vmem:[#allocation2 + $0x64] sm:$0xf] %v816_v53  ;;  %1063 = vst [vmem:[#allocation2 + $0x68] sm:$0x1] %v1062_v54  ;;  %v1065_v59 = vsel %vm5044_vm5, %v824_v44, %v1064_v42  ;;  %v502_v3 = vmul.f32 %v5004_v1, %v463_v50  ;;  %v503_v4 = vmul.f32 %v5004_v1, %v464_v52  ;;  %v571_v8 = vmax.f32 %v539_v62, 0.0 }
  0xa6   : > { %1066 = vst [vmem:[#allocation2 + $0x6c] sm:$0xf] %v1065_v59  ;;  %v3796_v6 = vpack.c.bf16 %v569_v60, %v569_v60  ;;  %v3797_v7 = vpack.c.bf16 %v570_v61, %v570_v61  ;;  %v504_v9 = vmul.f32 %v5004_v1, %v465_v57  ;;  %v832_v10 = vor.u32 %v830_v56, %v829_v63  ;;  %v1078_v44 = vld [vmem:[#allocation2 + $0x84] sm:$0xf]  ;;  %v1082_v52 = vld [vmem:[#allocation2 + $0x8c] sm:$0x1] }
  0xa7   : > { %v834_v11 = vrot.slane %v829_v63, 4  ;;  %v540_v12 = vadd.f32 %v5009_v2, %v501_v0  ;;  %v541_v13 = vadd.f32 %v5009_v2, %v502_v3  ;;  %v3798_v20 = vpack.c.bf16 %v571_v8, %v571_v8  ;;  %v1085_v62 = vld [vmem:[#allocation2 + $0x90] sm:$0xf] }
  0xa8   : > { %v836_v14 = vshrl.u32 %v3796_v6, 16  ;;  %v839_v15 = vshll.u32 %v3796_v6, 16  ;;  %v844_v16 = vshrl.u32 %v3797_v7, 16  ;;  %v847_v17 = vshll.u32 %v3797_v7, 16  ;;  %v468_v6 = vld [vmem:[%s4980_s30 + $0xd8] sm:$0xff]  ;;  %v469_v7 = vld [vmem:[%s4980_s30 + $0xe0] sm:$0xff] }
  0xa9   : > { %v833_v18 = vsel %vm5050_vm6, %v825_v45, %v832_v10  ;;  %v1069_v19 = vsel %vm5056_vm7, %v834_v11, %v1068_v5  ;;  %v572_v21 = vmax.f32 %v540_v12, 0.0  ;;  %v573_v24 = vmax.f32 %v541_v13, 0.0  ;;  %v467_v5 = vld [vmem:[%s4980_s30 + $0xd0] sm:$0xff] }
  0xaa   : > { %1067 = vst [vmem:[#allocation2 + $0x70] sm:$0xf] %v833_v18  ;;  %1070 = vst [vmem:[#allocation2 + $0x74] sm:$0x1] %v1069_v19  ;;  %v838_v22 = vrot.slane %v836_v14, 7  ;;  %v846_v23 = vrot.slane %v844_v16, 7  ;;  %v542_v25 = vadd.f32 %v5009_v2, %v503_v4  ;;  %v543_v31 = vadd.f32 %v5009_v2, %v504_v9 }
  0xab   : > { %v853_v28 = vshrl.u32 %v3798_v20, 16  ;;  %v856_v29 = vshll.u32 %v3798_v20, 16  ;;  %v3799_v30 = vpack.c.bf16 %v572_v21, %v572_v21  ;;  %v3800_v35 = vpack.c.bf16 %v573_v24, %v573_v24  ;;  %v470_v16 = vld [vmem:[%s4980_s30 + $0xe8] sm:$0xff]  ;;  %v1089_v18 = vld [vmem:[#allocation2 + $0x98] sm:$0x1] }
  0xac   : > { %v841_v33 = vor.u32 %v839_v15, %v838_v22  ;;  %v842_v37 = vrot.slane %v838_v22, 4  ;;  %v849_v32 = vor.u32 %v847_v17, %v846_v23  ;;  %v851_v38 = vrot.slane %v846_v23, 4 }
  0xad   : > { %v855_v39 = vrot.slane %v853_v28, 7  ;;  %v861_v34 = vshrl.u32 %v3799_v30, 16  ;;  %v864_v40 = vshll.u32 %v3799_v30, 16  ;;  %v574_v45 = vmax.f32 %v542_v25, 0.0 }
  0xae   : > { %v1072_v36 = vsel %vm5044_vm5, %v841_v33, %v1071_v26  ;;  %v850_v42 = vsel %vm5050_vm6, %v842_v37, %v849_v32  ;;  %v1076_v43 = vsel %vm5056_vm7, %v851_v38, %v1075_v27  ;;  %v870_v50 = vshrl.u32 %v3800_v35, 16  ;;  %v1092_v26 = vld [vmem:[#allocation2 + $0x9c] sm:$0xf] }
  0xaf   : > { %1073 = vst [vmem:[#allocation2 + $0x78] sm:$0xf] %v1072_v36  ;;  %1074 = vst [vmem:[#allocation2 + $0x7c] sm:$0xf] %v850_v42  ;;  %v858_v47 = vor.u32 %v856_v29, %v855_v39  ;;  %v859_v48 = vrot.slane %v855_v39, 4  ;;  %v863_v49 = vrot.slane %v861_v34, 7  ;;  %v3801_v54 = vpack.c.bf16 %v574_v45, %v574_v45 }
  0xb0   : > { %1077 = vst [vmem:[#allocation2 + $0x80] sm:$0x1] %v1076_v43  ;;  %v873_v53 = vshll.u32 %v3800_v35, 16  ;;  %v575_v55 = vmax.f32 %v543_v31, 0.0  ;;  %v505_v56 = vmul.f32 %v5004_v1, %v466_v41  ;;  %v872_v61 = vrot.slane %v870_v50, 7  ;;  %v471_v31 = vld [vmem:[%s4980_s30 + $0xf0] sm:$0xff] }
  0xb1   : > { %v1079_v57 = vsel %vm5044_vm5, %v858_v47, %v1078_v44  ;;  %v866_v59 = vor.u32 %v864_v40, %v863_v49  ;;  %v868_v60 = vrot.slane %v863_v49, 4  ;;  %v878_v63 = vshrl.u32 %v3801_v54, 16  ;;  %v472_v35 = vld [vmem:[%s4980_s30 + $0xf8] sm:$0xff]  ;;  %v1096_v49 = vld [vmem:[#allocation2 + $0xa4] sm:$0x1] }
  0xb2   : > { %1080 = vst [vmem:[#allocation2 + $0x84] sm:$0xf] %v1079_v57  ;;  %v881_v0 = vshll.u32 %v3801_v54, 16  ;;  %v3802_v3 = vpack.c.bf16 %v575_v55, %v575_v55  ;;  %v544_v4 = vadd.f32 %v5009_v2, %v505_v56  ;;  %v875_v10 = vor.u32 %v873_v53, %v872_v61 }
  0xb3   : > { %v867_v8 = vsel %vm5050_vm6, %v859_v48, %v866_v59  ;;  %v1083_v9 = vsel %vm5056_vm7, %v868_v60, %v1082_v52  ;;  %v876_v11 = vrot.slane %v872_v61, 4  ;;  %v880_v12 = vrot.slane %v878_v63, 7 }
  0xb4   : > { %1081 = vst [vmem:[#allocation2 + $0x88] sm:$0xf] %v867_v8  ;;  %1084 = vst [vmem:[#allocation2 + $0x8c] sm:$0x1] %v1083_v9  ;;  %v887_v13 = vshrl.u32 %v3802_v3, 16  ;;  %v890_v14 = vshll.u32 %v3802_v3, 16  ;;  %v1086_v17 = vsel %vm5044_vm5, %v875_v10, %v1085_v62  ;;  %v506_v19 = vmul.f32 %v5004_v1, %v467_v5 }
  0xb5   : > { %v576_v15 = vmax.f32 %v544_v4, 0.0  ;;  %v507_v20 = vmul.f32 %v5004_v1, %v468_v6  ;;  %v508_v21 = vmul.f32 %v5004_v1, %v469_v7  ;;  %1087 = vst [vmem:[#allocation2 + $0x90] sm:$0xf] %v1086_v17  ;;  %v883_v22 = vor.u32 %v881_v0, %v880_v12  ;;  %v1099_v5 = vld [vmem:[#allocation2 + $0xa8] sm:$0xf] }
  0xb6   : > { %v885_v23 = vrot.slane %v880_v12, 4  ;;  %v889_v24 = vrot.slane %v887_v13, 7  ;;  %v545_v27 = vadd.f32 %v5009_v2, %v506_v19  ;;  %v509_v30 = vmul.f32 %v5004_v1, %v470_v16  ;;  %v1103_v7 = vld [vmem:[#allocation2 + $0xb0] sm:$0x1]  ;;  %v1106_v13 = vld [vmem:[#allocation2 + $0xb4] sm:$0xf] }
  0xb7   : > { %v3803_v25 = vpack.c.bf16 %v576_v15, %v576_v15  ;;  %v546_v28 = vadd.f32 %v5009_v2, %v507_v20  ;;  %v547_v29 = vadd.f32 %v5009_v2, %v508_v21  ;;  %v884_v33 = vsel %vm5050_vm6, %v876_v11, %v883_v22 }
  0xb8   : > { %v1090_v37 = vsel %vm5056_vm7, %v885_v23, %v1089_v18  ;;  %v892_v32 = vor.u32 %v890_v14, %v889_v24  ;;  %1088 = vst [vmem:[#allocation2 + $0x94] sm:$0xf] %v884_v33  ;;  %v577_v34 = vmax.f32 %v545_v27, 0.0  ;;  %v548_v42 = vadd.f32 %v5009_v2, %v509_v30 }
  0xb9   : > { %1091 = vst [vmem:[#allocation2 + $0x98] sm:$0x1] %v1090_v37  ;;  %v895_v38 = vshrl.u32 %v3803_v25, 16  ;;  %v898_v39 = vshll.u32 %v3803_v25, 16  ;;  %v578_v40 = vmax.f32 %v546_v28, 0.0  ;;  %v579_v36 = vmax.f32 %v547_v29, 0.0 }
  0xba   : > { %v1093_v41 = vsel %vm5044_vm5, %v892_v32, %v1092_v26  ;;  %v510_v43 = vmul.f32 %v5004_v1, %v471_v31  ;;  %v893_v44 = vrot.slane %v889_v24, 4  ;;  %v3804_v47 = vpack.c.bf16 %v577_v34, %v577_v34  ;;  %v1110_v26 = vld [vmem:[#allocation2 + $0xbc] sm:$0x1] }
  0xbb   : > { %1094 = vst [vmem:[#allocation2 + $0x9c] sm:$0xf] %v1093_v41  ;;  %v897_v45 = vrot.slane %v895_v38, 7  ;;  %v3805_v48 = vpack.c.bf16 %v578_v40, %v578_v40  ;;  %v3806_v50 = vpack.c.bf16 %v579_v36, %v579_v36  ;;  %v580_v52 = vmax.f32 %v548_v42, 0.0  ;;  %v1113_v38 = vld [vmem:[#allocation2 + $0xc0] sm:$0xf] }
  0xbc   : > { %v549_v53 = vadd.f32 %v5009_v2, %v510_v43  ;;  %v511_v54 = vmul.f32 %v5004_v1, %v472_v35  ;;  %v904_v57 = vshrl.u32 %v3804_v47, 16  ;;  %v907_v59 = vshll.u32 %v3804_v47, 16  ;;  %v1117_v42 = vld [vmem:[#allocation2 + $0xc8] sm:$0x1] }
  0xbd   : > { %v900_v55 = vor.u32 %v898_v39, %v897_v45  ;;  %v902_v56 = vrot.slane %v897_v45, 4  ;;  %v912_v60 = vshrl.u32 %v3805_v48, 16  ;;  %v915_v61 = vshll.u32 %v3805_v48, 16 }
  0xbe   : > { %v921_v62 = vshrl.u32 %v3806_v50, 16  ;;  %v924_v63 = vshll.u32 %v3806_v50, 16  ;;  %v906_v4 = vrot.slane %v904_v57, 7  ;;  %v3807_v6 = vpack.c.bf16 %v580_v52, %v580_v52 }
  0xbf   : > { %v901_v0 = vsel %vm5050_vm6, %v893_v44, %v900_v55  ;;  %v1097_v3 = vsel %vm5056_vm7, %v902_v56, %v1096_v49  ;;  %v914_v1 = vrot.slane %v912_v60, 7  ;;  %v581_v9 = vmax.f32 %v549_v53, 0.0 }
  0xc0   : > { %1095 = vst [vmem:[#allocation2 + $0xa0] sm:$0xf] %v901_v0  ;;  %1098 = vst [vmem:[#allocation2 + $0xa4] sm:$0x1] %v1097_v3  ;;  %v923_v8 = vrot.slane %v921_v62, 7  ;;  %v550_v10 = vadd.f32 %v5009_v2, %v511_v54  ;;  %v909_v11 = vor.u32 %v907_v59, %v906_v4  ;;  %v910_v12 = vrot.slane %v906_v4, 4 }
  0xc1   : > { %v929_v14 = vshrl.u32 %v3807_v6, 16  ;;  %v932_v15 = vshll.u32 %v3807_v6, 16  ;;  %v917_v16 = vor.u32 %v915_v61, %v914_v1  ;;  %v919_v17 = vrot.slane %v914_v1, 4 }
  0xc2   : > { %v926_v18 = vor.u32 %v924_v63, %v923_v8  ;;  %v927_v19 = vrot.slane %v923_v8, 4  ;;  %v1100_v20 = vsel %vm5044_vm5, %v909_v11, %v1099_v5  ;;  %v3808_v22 = vpack.c.bf16 %v581_v9, %v581_v9 }
  0xc3   : > { %v931_v21 = vrot.slane %v929_v14, 7  ;;  %v582_v23 = vmax.f32 %v550_v10, 0.0  ;;  %1101 = vst [vmem:[#allocation2 + $0xa8] sm:$0xf] %v1100_v20  ;;  %v918_v24 = vsel %vm5050_vm6, %v910_v12, %v917_v16  ;;  %v1104_v2 = vsel %vm5056_vm7, %v919_v17, %v1103_v7 }
  0xc4   : > { %v1107_v25 = vsel %vm5044_vm5, %v926_v18, %v1106_v13  ;;  %1102 = vst [vmem:[#allocation2 + $0xac] sm:$0xf] %v918_v24  ;;  %1105 = vst [vmem:[#allocation2 + $0xb0] sm:$0x1] %v1104_v2  ;;  %v938_v29 = vshrl.u32 %v3808_v22, 16  ;;  %v941_v30 = vshll.u32 %v3808_v22, 16 }
  0xc5   : > { %1108 = vst [vmem:[#allocation2 + $0xb4] sm:$0xf] %v1107_v25  ;;  %v934_v27 = vor.u32 %v932_v15, %v931_v21  ;;  %v936_v28 = vrot.slane %v931_v21, 4  ;;  %v3809_v31 = vpack.c.bf16 %v582_v23, %v582_v23 }
  0xc6   : > { %v940_v32 = vrot.slane %v938_v29, 7 }
  0xc7   : > { %v935_v33 = vsel %vm5050_vm6, %v927_v19, %v934_v27  ;;  %v1111_v37 = vsel %vm5056_vm7, %v936_v28, %v1110_v26  ;;  %v946_v39 = vshrl.u32 %v3809_v31, 16  ;;  %v949_v34 = vshll.u32 %v3809_v31, 16 }
  0xc8   : > { %1109 = vst [vmem:[#allocation2 + $0xb8] sm:$0xf] %v935_v33  ;;  %1112 = vst [vmem:[#allocation2 + $0xbc] sm:$0x1] %v1111_v37  ;;  %v943_v40 = vor.u32 %v941_v30, %v940_v32  ;;  %v944_v35 = vrot.slane %v940_v32, 4 }
  0xc9   : > { %v948_v41 = vrot.slane %v946_v39, 7 }
  0xca   : > { %v1114_v36 = vsel %vm5044_vm5, %v943_v40, %v1113_v38 }
  0xcb   : > { %1115 = vst [vmem:[#allocation2 + $0xc0] sm:$0xf] %v1114_v36  ;;  %v951_v43 = vor.u32 %v949_v34, %v948_v41  ;;  %v953_v44 = vrot.slane %v948_v41, 4 }
  0xcd   : > { %v952_v45 = vsel %vm5050_vm6, %v944_v35, %v951_v43  ;;  %v1118_v47 = vsel %vm5056_vm7, %v953_v44, %v1117_v42 }
  0xce   : > { %1116 = vst [vmem:[#allocation2 + $0xc4] sm:$0xf] %v952_v45  ;;  %1119 = vst [vmem:[#allocation2 + $0xc8] sm:$0x1] %v1118_v47 }
  0xcf PF: > { %v4398_v48 = vld [vmem:[#allocation6 + $0x138] sm:$0xff]   ;;  %v4401_v46 = vld [vmem:[#allocation6 + $0x130] sm:$0xff]   ;;  %v4404_v51 = vld [vmem:[#allocation6 + $0x128] sm:$0xff]   ;;  %s3810_s5 = smul.u32 96, %s4744_s11  ;;  %vm1325_vm8 = vcmask 1046528   ;;  %s3827_s25 = sshll.u32 %s4744_s11, 7 }
  0xd0   : > { %v4399_v49 = vld [vmem:[#allocation6 + $0x178] sm:$0xff]   ;;  %3877 = vmatprep.subr.bf16.mxu0 %v4398_v48  ;;  %v4402_v52 = vld [vmem:[#allocation6 + $0x170] sm:$0xff]   ;;  %v4405_v54 = vld [vmem:[#allocation6 + $0x168] sm:$0xff]   ;;  %vm1220_vm9 = vsmask.f32 7424  ;;  %s5493_s12 = scalar_lea.vmem %s4980_s30, %s3827_s25 [#allocation3]  ;;  %s5897_s16 = sld [smem:[#allocation23_spill]] }
  0xd1   : > { %v4400_v50 = vld [vmem:[#allocation6 + $0xf8] sm:$0xff]   ;;  %4133 = vmatprep.subr.bf16.mxu1 %v4399_v49  ;;  %v4403_v53 = vld [vmem:[#allocation6 + $0xf0] sm:$0xff]   ;;  %v4406_v58 = vld [vmem:[#allocation6 + $0xe8] sm:$0xff]   ;;  %s5227_s27 = scalar_lea.vmem [#allocation2], %s3810_s5  ;;  %s5898_s6 = sld [smem:[#allocation25_spill]] }
  0xd2   : > { %3878 = vmatpush3.bf16.msra.mxu0 %v4400_v50  ;;  %4134 = vmatpush3.bf16.msra.mxu1 %v4399_v49  ;;  %v4407_v55 = vld [vmem:[#allocation6 + $0x120] sm:$0xff]   ;;  %v4410_v59 = vld [vmem:[#allocation6 + $0x118] sm:$0xff]   ;;  %v4413_v62 = vld [vmem:[#allocation6 + $0x110] sm:$0xff]   ;;  %s5899_s8 = sld [smem:[#allocation17_spill]]  ;;  %s3828_s20 = sshll.u32 %s4744_s11, 4 }
  0xd3   : > { %3879 = vmatprep.subr.bf16.mxu0 %v4401_v46  ;;  %4135 = vmatprep.subr.bf16.mxu1 %v4402_v52  ;;  %v4408_v56 = vld [vmem:[#allocation6 + $0x160] sm:$0xff]   ;;  %v4411_v60 = vld [vmem:[#allocation6 + $0x158] sm:$0xff]   ;;  %v4414_v63 = vld [vmem:[#allocation6 + $0x150] sm:$0xff]   ;;  %s3360_s1 = sshll.u32 %s4997_s17, 4  ;;  %s5900_s5 = sld [smem:[#allocation19_spill]]  ;;  %s5742_s1 = int_to_ptr.vmem [resolvable:$true] %s3360_s1 }
  0xd4   : > { %v4409_v57 = vld [vmem:[#allocation6 + $0xe0] sm:$0xff]   ;;  %v4412_v61 = vld [vmem:[#allocation6 + $0xd8] sm:$0xff]   ;;  %v4415_v0 = vld [vmem:[#allocation6 + $0xd0] sm:$0xff]   ;;  %s3325_s30 = scalar_lea.sflag [#allocation11], %s4991_s4 }
  0xd5   : > { %v4416_v3 = vld [vmem:[#allocation6 + $0x108] sm:$0xff]   ;;  %v4419_v6 = vld [vmem:[#allocation6 + $0x100] sm:$0xff]   ;;  %v4422_v7 = vld [vmem:[%s5227_s27 + $0xc] sm:$0xff]  }
  0xd6   : > { %3880 = vmatpush3.bf16.msra.mxu0 %v4403_v53  ;;  %4136 = vmatpush3.bf16.msra.mxu1 %v4402_v52  ;;  %v4417_v4 = vld [vmem:[#allocation6 + $0x148] sm:$0xff]   ;;  %v4420_v1 = vld [vmem:[#allocation6 + $0x140] sm:$0xff]   ;;  %v4423_v8 = vld [vmem:[%s5227_s27 + $0x14] ss:$0 sps:$4 sm:$0x11]   ;;  %v1507_v10 = vshrl.u32 %v4422_v7, 16 }
  0xd7   : > { %3881 = vmatprep.subr.bf16.mxu0 %v4404_v51  ;;  %4137 = vmatprep.subr.bf16.mxu1 %v4405_v54  ;;  %v4418_v5 = vld [vmem:[#allocation6 + $0xc8] sm:$0xff]   ;;  %v4421_v9 = vld [vmem:[#allocation6 + $0xc0] sm:$0xff]   ;;  %v1509_v11 = vshll.u32 %v4422_v7, 16  ;;  %v1514_v12 = vshll.u32 %v4423_v8, 16  ;;  %v1610_v13 = vrot.slane %v4422_v7, 1  ;;  %v4426_v15 = vld [vmem:[#allocation6 + $0x78] sm:$0xff]  }
  0xd8   : > { %v4424_v14 = vld [vmem:[%s5227_s27 + $0x18] sm:$0xff]   ;;  %v1611_v16 = vrot.slane %v4423_v8, 1  ;;  %v4425_v17 = vld [vmem:[%s5227_s27 + $0x20] ss:$0 sps:$4 sm:$0x11]   ;;  %v4427_v21 = vld [vmem:[#allocation6 + $0xb8] sm:$0xff]  }
  0xd9   : > { %v1511_v18 = vrot.slane %v1509_v11, 1  ;;  %v1516_v19 = vrot.slane %v1514_v12, 1  ;;  %v1613_v20 = vrot.slane %v4424_v14, 1  ;;  %v1614_v23 = vrot.slane %v4425_v17, 1  ;;  %v4428_v24 = vld [vmem:[#allocation6 + $0x38] sm:$0xff]   ;;  %v4429_v26 = vld [vmem:[#allocation6 + $0x70] sm:$0xff]  }
  0xda   : > { %3882 = vmatpush3.bf16.msra.mxu0 %v4406_v58  ;;  %4138 = vmatpush3.bf16.msra.mxu1 %v4405_v54  ;;  %v1612_v22 = vsel %vm1325_vm8, %v1610_v13, %v1611_v16  ;;  %v1519_v28 = vshrl.u32 %v4424_v14, 16  ;;  %v1521_v29 = vshll.u32 %v4424_v14, 16  ;;  %v1526_v30 = vshll.u32 %v4425_v17, 16  ;;  %v4431_v31 = vld [vmem:[%s5227_s27 + $0x24] sm:$0xff]   ;;  %v5239_v35 = vld [vmem:[%s5227_s27 + $0x30] sm:$0xff]   ;;  %v4438_v50 = vld [vmem:[#allocation6 + $0x60] sm:$0xff]  }
  0xdb   : > { %3883 = vmatprep.subr.bf16.mxu0 %v4407_v55  ;;  %4139 = vmatprep.subr.bf16.mxu1 %v4408_v56  ;;  %v1512_v2 = vor.u32 %v1511_v18, %v1507_v10  ;;  %v1615_v25 = vsel %vm1325_vm8, %v1613_v20, %v1614_v23  ;;  %v4430_v33 = vld [vmem:[#allocation6 + $0x30] sm:$0xff]   ;;  %v1616_v39 = vrot.slane %v4431_v31, 1  ;;  %v4434_v41 = vld [vmem:[%s5227_s27 + $0x38] ss:$0 sps:$4 sm:$0x11]   ;;  %v4435_v36 = vld [vmem:[#allocation6 + $0x68] sm:$0xff]  }
  0xdc   : > { %4149 = vmatprep.mubr.bf16.mxu1 %v1612_v22  ;;  %v1523_v37 = vrot.slane %v1521_v29, 1  ;;  %v1528_v32 = vrot.slane %v1526_v30, 1  ;;  %v4432_v38 = vld [vmem:[%s5227_s27 + $0x2c] ss:$0 sps:$4 sm:$0x11]   ;;  %v1619_v44 = vrot.slane %v5239_v35, 1 }
  0xdd   : > { %v1517_v27 = vsel %vm1220_vm9, %v1512_v2, %v1516_v19  ;;  %v1617_v40 = vrot.slane %v4432_v38, 1  ;;  %v1620_v45 = vrot.slane %v4434_v41, 1  ;;  %v4436_v47 = vld [vmem:[#allocation6 + $0xb0] sm:$0xff]   ;;  %v4437_v48 = vld [vmem:[#allocation6 + $0x28] sm:$0xff]   ;;  %v1531_v46 = vshrl.u32 %v4431_v31, 16  ;;  %v4439_v52 = vld [vmem:[#allocation6 + $0x20] sm:$0xff]  }
  0xde   : > { %3884 = vmatpush3.bf16.msra.mxu0 %v4409_v57  ;;  %4140 = vmatpush3.bf16.msra.mxu1 %v4408_v56  ;;  %v1524_v34 = vor.u32 %v1523_v37, %v1519_v28  ;;  %v1533_v53 = vshll.u32 %v4431_v31, 16  ;;  %v1538_v51 = vshll.u32 %v4432_v38, 16  ;;  %v5247_v54 = vld [vmem:[%s5227_s27 + $0x3c] sm:$0xff]   ;;  %v5250_v56 = vld [vmem:[%s5227_s27 + $0x44] ss:$0 sps:$4 sm:$0x11]  }
  0xdf   : > { %3885 = vmatprep.subr.bf16.mxu0 %v4410_v59  ;;  %4141 = vmatprep.subr.bf16.mxu1 %v4411_v60  ;;  %v1618_v43 = vsel %vm1325_vm8, %v1616_v39, %v1617_v40  ;;  %v1621_v49 = vsel %vm1325_vm8, %v1619_v44, %v1620_v45  ;;  %v1622_v57 = vrot.slane %v5247_v54, 1  ;;  %v4447_v8 = vld [vmem:[#allocation6 + $0x50] sm:$0xff]   ;;  %v1545_v11 = vshll.u32 %v5239_v35, 16  ;;  %v5268_v13 = vld [vmem:[%s5227_s27 + $0x54] sm:$0xff]   ;;  %v5276_v20 = vld [vmem:[%s5227_s27 + $0x60] sm:$0xff]   ;;  %s3769_s26 = sshll.u32 %s5899_s8, 5 }
  0xe0   : > { %1867 = vmatprep.mubr.bf16.mxu0 %v1517_v27  ;;  %v1529_v42 = vsel %vm1220_vm9, %v1524_v34, %v1528_v32  ;;  %v1535_v58 = vrot.slane %v1533_v53, 1  ;;  %v1540_v55 = vrot.slane %v1538_v51, 1  ;;  %v4448_v10 = vld [vmem:[#allocation6 + $0x10] sm:$0xff]   ;;  %v1550_v12 = vshll.u32 %v4434_v41, 16  ;;  %v4453_v22 = vld [vmem:[#allocation6 + $0x48] sm:$0xff]   ;;  %v4456_v29 = vld [vmem:[#allocation6 + $0x40] sm:$0xff]   ;;  %s5721_s18 = sadd.s32 %s3828_s20, %s3769_s26 }
  0xe1   : > { %v5271_v16 = vld [vmem:[%s5227_s27 + $0x5c] ss:$0 sps:$4 sm:$0x11]   ;;  %v1628_v17 = vrot.slane %v5268_v13, 1  ;;  %v1631_v2 = vrot.slane %v5276_v20, 1  ;;  %v4455_v27 = vld [vmem:[#allocation6 + $0x8] sm:$0xff]  }
  0xe2   : > { %3886 = vmatpush3.bf16.msra.mxu0 %v4412_v61  ;;  %4142 = vmatpush3.bf16.msra.mxu1 %v4411_v60  ;;  %v1536_v59 = vor.u32 %v1535_v58, %v1531_v46  ;;  %v1623_v60 = vrot.slane %v5250_v56, 1  ;;  %v5255_v61 = vld [vmem:[%s5227_s27 + $0x48] sm:$0xff]   ;;  %v1629_v19 = vrot.slane %v5271_v16, 1  ;;  %v1555_v30 = vshrl.u32 %v5247_v54, 16  ;;  %v5291_v32 = vld [vmem:[%s5227_s27] sm:$0xff]   ;;  %v4460_v41 = vld [vmem:[#allocation6 + $0x98] sm:$0xff]  }
  0xe3   : > { %3887 = vmatprep.subr.bf16.mxu0 %v4413_v62  ;;  %4143 = vmatprep.subr.bf16.mxu1 %v4414_v63  ;;  %v5258_v62 = vld [vmem:[%s5227_s27 + $0x50] ss:$0 sps:$4 sm:$0x11]   ;;  %v1562_v37 = vshll.u32 %v5250_v56, 16  ;;  %v1222_v40 = vshrl.u32 %v5291_v32, 16  ;;  %v1569_v44 = vshll.u32 %v5255_v61, 16 }
  0xe4   : > { %v5294_v34 = vld [vmem:[%s5227_s27 + $0x8] ss:$0 sps:$4 sm:$0x11]   ;;  %v5302_v45 = vld [vmem:[%s5227_s27 + $0xc] sm:$0xff]   ;;  %s3774_s11 = sshll.u32 %s5721_s18, 7  ;;  %s3770_s24 = sshll.u32 %s5721_s18, 6 }
  0xe5   : > { %v1564_v39 = vrot.slane %v1562_v37, 1  ;;  %v1571_v46 = vrot.slane %v1569_v44, 1  ;;  %v1234_v53 = vshrl.u32 %v5302_v45, 16  ;;  %v4471_v37 = vld [vmem:[#allocation6 + $0x80] sm:$0xff]   ;;  %p5903_p10 = scmp.ne.s32.totalorder %s5900_s5, 0  ;;  %s4770_s8 = smov [#allocation10]  }
  0xe6   : > { %3888 = vmatpush3.bf16.msra.mxu0 %v4415_v0  ;;  %4144 = vmatpush3.bf16.msra.mxu1 %v4414_v63  ;;  %v4444_v63 = vld [vmem:[#allocation6 + $0x58] sm:$0xff]   ;;  %v1541_v0 = vsel %vm1220_vm9, %v1536_v59, %v1540_v55  ;;  %v1236_v55 = vshll.u32 %v5302_v45, 16  ;;  %v4463_v59 = vld [vmem:[#allocation6 + $0x90] sm:$0xff]   ;;  %s4610_s20 = sshll.u32 %s4770_s8, 4  ;;  %s4611_s20 = int_to_ptr.vmem [resolvable:$false] %s4610_s20 }
  0xe7   : > { %3889 = vmatprep.subr.bf16.mxu0 %v4416_v3  ;;  %4145 = vmatprep.subr.bf16.mxu1 %v4417_v4  ;;  %v1624_v3 = vsel %vm1325_vm8, %v1622_v57, %v1623_v60  ;;  %s4612_s26 = scalar_lea.vmem %s4611_s20, 4096  ;;  %p4613_p4 = scmp.lt.s32.totalorder %s5742_s1, %s4611_s20 }
  0xea   : > { %3890 = vmatpush3.bf16.msra.mxu0 %v4418_v5  ;;  %4146 = vmatpush3.bf16.msra.mxu1 %v4417_v4  ;;  %v1625_v4 = vrot.slane %v5255_v61, 1  ;;  %v1626_v5 = vrot.slane %v5258_v62, 1 }
  0xeb   : > { %3891 = vmatprep.subr.bf16.mxu0 %v4419_v6  ;;  %4147 = vmatprep.subr.bf16.mxu1 %v4420_v1  ;;  %v4445_v6 = vld [vmem:[#allocation6 + $0xa8] sm:$0xff]  }
  0xee   : > { %3892 = vmatpush3.bf16.msra.mxu0 %v4421_v9  ;;  %4148 = vmatpush3.bf16.msra.mxu1 %v4420_v1  ;;  %v4446_v1 = vld [vmem:[#allocation6 + $0x18] sm:$0xff]   ;;  %v1543_v9 = vshrl.u32 %v5239_v35, 16 }
  0xef   : > { %3957 = vmatprep.subr.bf16.mxu1 %v4426_v15  ;;  %4165 = vmatprep.subr.bf16.mxu0 %v4427_v21  ;;  %v1552_v15 = vrot.slane %v1550_v12, 1 }
  0xf1   : > { %1868 = vmatmul.mubr.bf16.vlgmr.msra.gmra.mxu0 %v4422_v7  ;;  %4150 = vmatmul.mubr.bf16.vlgmr.msra.gmra.mxu1 %v1615_v25  ;;  %v1627_v7 = vsel %vm1325_vm8, %v1625_v4, %v1626_v5 }
  0xf2   : > { %3958 = vmatpush3.bf16.msra.mxu1 %v4428_v24  ;;  %4166 = vmatpush3.bf16.msra.mxu0 %v4427_v21  ;;  %v5279_v21 = vld [vmem:[%s5227_s27 + $0x68] ss:$0 sps:$4 sm:$0x11]   ;;  %v1630_v24 = vsel %vm1325_vm8, %v1628_v17, %v1629_v19  ;;  %v1593_v19 = vshll.u32 %v5276_v20, 16 }
  0xf3   : > { %3959 = vmatprep.subr.bf16.mxu1 %v4429_v26  ;;  %1875 = vmatprep.mubr.bf16.mxu0 %v1529_v42  ;;  %v1632_v25 = vrot.slane %v5279_v21, 1  ;;  %v4454_v26 = vld [vmem:[#allocation6 + $0xa0] sm:$0xff]   ;;  %v1229_v42 = vshll.u32 %v5294_v34, 16 }
  0xf4   : > { %4153 = vmatprep.mubr.bf16.mxu1 %v1618_v43  ;;  %4167 = vmatprep.subr.bf16.mxu0 %v4436_v47  ;;  %v1567_v43 = vshrl.u32 %v5255_v61, 16 }
  0xf5   : > { %v1633_v28 = vsel %vm1325_vm8, %v1631_v2, %v1632_v25  ;;  %v5334_v2 = vld [vmem:[%s5227_s27 + $0x24] sm:$0xff]  }
  0xf6   : > { %3960 = vmatpush3.bf16.msra.mxu1 %v4430_v33  ;;  %4168 = vmatpush3.bf16.msra.mxu0 %v4436_v47  ;;  %v1557_v33 = vshll.u32 %v5247_v54, 16  ;;  %v1572_v56 = vor.u32 %v1571_v46, %v1567_v43 }
  0xf7   : > { %3961 = vmatprep.subr.bf16.mxu1 %v4435_v36  ;;  %4169 = vmatprep.subr.bf16.mxu0 %v4445_v6 }
  0xf8   : > { %v1559_v38 = vrot.slane %v1557_v33, 1 }
  0xf9   : > { %1876 = vmatmul.mubr.bf16.gmra.mxu0 %v4424_v14  ;;  %4154 = vmatmul.mubr.bf16.gmra.mxu1 %v1621_v49  ;;  %v1547_v14 = vrot.slane %v1545_v11, 1  ;;  %v4468_v11 = vld [vmem:[#allocation6 + $0x230] sm:$0xff]  }
  0xfa   : > { %3962 = vmatpush3.bf16.msra.mxu1 %v4437_v48  ;;  %1883 = vmatprep.mubr.bf16.mxu0 %v1541_v0  ;;  %v1560_v36 = vor.u32 %v1559_v38, %v1555_v30  ;;  %v1574_v48 = vshll.u32 %v5258_v62, 16  ;;  %v1238_v62 = vrot.slane %v1236_v55, 1  ;;  %v1579_v0 = vshrl.u32 %v5268_v13, 16 }
  0xfb   : > { %3963 = vmatprep.subr.bf16.mxu1 %v4438_v50  ;;  %4157 = vmatprep.mubr.bf16.mxu1 %v1624_v3  ;;  %v1548_v18 = vor.u32 %v1547_v14, %v1543_v9  ;;  %v1231_v50 = vrot.slane %v1229_v42, 1  ;;  %v1581_v3 = vshll.u32 %v5268_v13, 16  ;;  %v4467_v9 = vld [vmem:[#allocation6 + $0x88] sm:$0xff]   ;;  %v1258_v30 = vshrl.u32 %v5334_v2, 16  ;;  %v4475_v42 = vld [vmem:[#allocation6 + $0x1f8] sm:$0xff]  }
  0xfc   : > { %4170 = vmatpush3.bf16.msra.mxu0 %v4445_v6  ;;  %v1565_v49 = vsel %vm1220_vm9, %v1560_v36, %v1564_v39  ;;  %v1576_v58 = vrot.slane %v1574_v48, 1  ;;  %v1239_v6 = vor.u32 %v1238_v62, %v1234_v53  ;;  %v4472_v39 = vld [vmem:[#allocation6 + $0x228] sm:$0xff]   ;;  %v5349_v36 = vld [vmem:[%s5227_s27 + $0x38] ss:$0 sps:$4 sm:$0x11]   ;;  %v1326_v53 = vrot.slane %v5291_v32, 1 }
  0xfd   : > { %v1553_v23 = vsel %vm1220_vm9, %v1548_v18, %v1552_v15  ;;  %4171 = vmatprep.subr.bf16.mxu0 %v4454_v26  ;;  %v1591_v18 = vshrl.u32 %v5276_v20, 16  ;;  %v1277_v46 = vshll.u32 %v5349_v36, 16 }
  0xfe   : > { %3964 = vmatpush3.bf16.msra.mxu1 %v4439_v52  ;;  %v5307_v52 = vld [vmem:[%s5227_s27 + $0x14] ss:$0 sps:$4 sm:$0x11]   ;;  %v1577_v4 = vsel %vm1220_vm9, %v1572_v56, %v1576_v58  ;;  %v5361_v58 = vld [vmem:[%s5227_s27 + $0x3c] sm:$0xff]  }
  0xff   : > { %3965 = vmatprep.subr.bf16.mxu1 %v4444_v63  ;;  %v1241_v57 = vshll.u32 %v5307_v52, 16  ;;  %v4464_v63 = vld [vmem:[#allocation6 + $0x238] sm:$0xff]   ;;  %v1279_v56 = vrot.slane %v1277_v46, 1  ;;  %v1282_v62 = vshrl.u32 %v5361_v58, 16 }
 0x100   : > { %4172 = vmatpush3.bf16.msra.mxu0 %v4454_v26  ;;  %v1595_v26 = vrot.slane %v1593_v19, 1 }
 0x101   : > { %1884 = vmatmul.mubr.bf16.gmra.mxu0 %v4431_v31  ;;  %4158 = vmatmul.mubr.bf16.gmra.mxu1 %v1627_v7  ;;  %v4457_v31 = vld [vmem:[#allocation6] sm:$0xff]   ;;  %v1243_v5 = vrot.slane %v1241_v57, 1 }
 0x102   : > { %3966 = vmatpush3.bf16.msra.mxu1 %v4446_v1  ;;  %1891 = vmatprep.mubr.bf16.mxu0 %v1553_v23  ;;  %v1583_v1 = vrot.slane %v1581_v3, 1  ;;  %v5320_v7 = vld [vmem:[%s5227_s27 + $0x18] sm:$0xff]  }
 0x103   : > { %3967 = vmatprep.subr.bf16.mxu1 %v4447_v8  ;;  %4161 = vmatprep.mubr.bf16.mxu1 %v1630_v24  ;;  %v5323_v8 = vld [vmem:[%s5227_s27 + $0x20] ss:$0 sps:$4 sm:$0x11]   ;;  %v1244_v12 = vsel %vm1220_vm9, %v1239_v6, %v1243_v5  ;;  %v1246_v15 = vshrl.u32 %v5320_v7, 16  ;;  %v5378_v5 = vld [vmem:[%s5227_s27 + $0x48] sm:$0xff]  }
 0x104   : > { %4173 = vmatprep.subr.bf16.mxu0 %v4460_v41  ;;  %v1584_v14 = vor.u32 %v1583_v1, %v1579_v0  ;;  %v1253_v17 = vshll.u32 %v5323_v8, 16  ;;  %v4478_v6 = vld [vmem:[#allocation6 + $0x1f0] sm:$0xff]  }
 0x105   : > { %4174 = vmatpush3.bf16.msra.mxu0 %v4460_v41 }
 0x106   : > { %3968 = vmatpush3.bf16.msra.mxu1 %v4448_v10  ;;  %4175 = vmatprep.subr.bf16.mxu0 %v4463_v59  ;;  %v1255_v25 = vrot.slane %v1253_v17, 1  ;;  %v4482_v17 = vld [vmem:[#allocation6 + $0x1e8] sm:$0xff]  }
 0x107   : > { %3969 = vmatprep.subr.bf16.mxu1 %v4453_v22  ;;  %v1598_v22 = vshll.u32 %v5279_v21, 16  ;;  %v1260_v21 = vshll.u32 %v5334_v2, 16 }
 0x109   : > { %1892 = vmatmul.mubr.bf16.gmra.mxu0 %v5239_v35  ;;  %4162 = vmatmul.mubr.bf16.gmra.mxu1 %v1633_v28  ;;  %v1224_v35 = vshll.u32 %v5291_v32, 16  ;;  %v5338_v28 = vld [vmem:[%s5227_s27 + $0x2c] ss:$0 sps:$4 sm:$0x11]   ;;  %v1262_v38 = vrot.slane %v1260_v21, 1 }
 0x10a   : > { %3970 = vmatpush3.bf16.msra.mxu1 %v4455_v27  ;;  %1899 = vmatprep.mubr.bf16.mxu0 %v1565_v49  ;;  %v1600_v27 = vrot.slane %v1598_v22, 1  ;;  %v1265_v33 = vshll.u32 %v5338_v28, 16 }
 0x10b   : > { %3971 = vmatprep.subr.bf16.mxu1 %v4456_v29  ;;  %v1226_v47 = vrot.slane %v1224_v35, 1  ;;  %4176 = vmatpush3.bf16.msra.mxu0 %v4463_v59  ;;  %v1263_v35 = vor.u32 %v1262_v38, %v1258_v30  ;;  %v1329_v59 = vrot.slane %v5302_v45, 1  ;;  %v1344_v38 = vrot.slane %v5378_v5, 1 }
 0x10c   : > { %4177 = vmatprep.subr.bf16.mxu0 %v4467_v9  ;;  %v1267_v41 = vrot.slane %v1265_v33, 1  ;;  %v1341_v33 = vrot.slane %v5361_v58, 1 }
 0x10d   : > { %v1227_v51 = vor.u32 %v1226_v47, %v1222_v40  ;;  %v5346_v40 = vld [vmem:[%s5227_s27 + $0x30] sm:$0xff]   ;;  %v4476_v47 = vld [vmem:[#allocation6 + $0x220] sm:$0xff]  }
 0x10e   : > { %3972 = vmatpush3.bf16.msra.mxu1 %v4457_v31  ;;  %v1596_v31 = vor.u32 %v1595_v26, %v1591_v18  ;;  %v1272_v44 = vshll.u32 %v5346_v40, 16  ;;  %v1270_v48 = vshrl.u32 %v5346_v40, 16  ;;  %v1268_v49 = vsel %vm1220_vm9, %v1263_v35, %v1267_v41  ;;  %v5398_v26 = vld [vmem:[%s5227_s27 + $0x5c] ss:$0 sps:$4 sm:$0x11]  }
 0x10f   : > { %v1232_v60 = vsel %vm1220_vm9, %v1227_v51, %v1231_v50  ;;  %4197 = vmatprep.subr.bf16.mxu1 %v4464_v63  ;;  %4178 = vmatpush3.bf16.msra.mxu0 %v4467_v9  ;;  %v1327_v51 = vrot.slane %v5294_v34, 1  ;;  %v1330_v34 = vrot.slane %v5307_v52, 1  ;;  %v5381_v52 = vld [vmem:[%s5227_s27 + $0x50] ss:$0 sps:$4 sm:$0x11]   ;;  %v1313_v41 = vshll.u32 %v5398_v26, 16 }
 0x110   : > { %2205 = vmatprep.mubr.bf16.mxu1 %v1232_v60  ;;  %4179 = vmatprep.subr.bf16.mxu0 %v4471_v37  ;;  %v1601_v43 = vsel %vm1220_vm9, %v1596_v31, %v1600_v27  ;;  %v1274_v50 = vrot.slane %v1272_v44, 1  ;;  %v1284_v60 = vshll.u32 %v5361_v58, 16  ;;  %v1301_v22 = vshll.u32 %v5381_v52, 16  ;;  %v4497_v27 = vld [vmem:[#allocation6 + $0x208] sm:$0xff]   ;;  %v5412_v44 = vld [vmem:[%s5227_s27 + $0x18] sm:$0xff]  }
 0x111   : > { %1900 = vmatmul.mubr.bf16.gmra.mxu0 %v5247_v54  ;;  %v1586_v54 = vshll.u32 %v5271_v16, 16  ;;  %2206 = vmatmul.mubr.bf16.vlgmr.msra.gmra.mxu1 %v5291_v32  ;;  %v1248_v16 = vshll.u32 %v5320_v7, 16  ;;  %v1328_v57 = vsel %vm1325_vm8, %v1326_v53, %v1327_v51  ;;  %v4483_v32 = vld [vmem:[#allocation6 + $0x218] sm:$0xff]   ;;  %v1315_v46 = vrot.slane %v1313_v41, 1  ;;  %v4492_v51 = vld [vmem:[#allocation6 + $0x1d0] sm:$0xff]  }
 0x112   : > { %1907 = vmatprep.mubr.bf16.mxu0 %v1577_v4  ;;  %4198 = vmatpush3.bf16.msra.mxu1 %v4464_v63  ;;  %v1275_v55 = vor.u32 %v1274_v50, %v1270_v48  ;;  %v1286_v63 = vrot.slane %v1284_v60, 1  ;;  %v1333_v4 = vrot.slane %v5323_v8, 1  ;;  %v1335_v8 = vrot.slane %v5334_v2, 1 }
 0x113   : > { %v1588_v10 = vrot.slane %v1586_v54, 1  ;;  %2213 = vmatprep.mubr.bf16.mxu1 %v1244_v12  ;;  %4199 = vmatprep.subr.bf16.mxu1 %v4468_v11  ;;  %v1250_v24 = vrot.slane %v1248_v16, 1  ;;  %v1331_v54 = vsel %vm1325_vm8, %v1329_v59, %v1330_v34  ;;  %v4479_v12 = vld [vmem:[#allocation6 + $0x1b0] sm:$0xff]   ;;  %v1338_v16 = vrot.slane %v5346_v40, 1 }
 0x114   : > { %4180 = vmatpush3.bf16.msra.mxu0 %v4471_v37  ;;  %v1280_v3 = vsel %vm1220_vm9, %v1275_v55, %v1279_v56  ;;  %v1287_v1 = vor.u32 %v1286_v63, %v1282_v62  ;;  %v1303_v30 = vrot.slane %v1301_v22, 1  ;;  %v2470_v53 = vshll.u32 %v5412_v44, 16  ;;  %v5420_v56 = vld [vmem:[%s5227_s27 + $0x24] sm:$0xff]  }
 0x115   : > { %v1589_v23 = vsel %vm1220_vm9, %v1584_v14, %v1588_v10  ;;  %v1251_v29 = vor.u32 %v1250_v24, %v1246_v15  ;;  %4037 = vmatprep.subr.bf16.mxu0 %v4475_v42  ;;  %v1296_v10 = vshll.u32 %v5378_v5, 16  ;;  %v1336_v14 = vrot.slane %v5338_v28, 1  ;;  %v5394_v24 = vld [vmem:[%s5227_s27 + $0x54] sm:$0xff]   ;;  %v4493_v59 = vld [vmem:[#allocation6 + $0x190] sm:$0xff]  }
 0x116   : > { %4200 = vmatpush3.bf16.msra.mxu1 %v4468_v11  ;;  %v4490_v11 = vld [vmem:[#allocation6 + $0x210] sm:$0xff]   ;;  %v1294_v15 = vshrl.u32 %v5378_v5, 16  ;;  %v1308_v21 = vshll.u32 %v5394_v24, 16  ;;  %v1306_v35 = vshrl.u32 %v5394_v24, 16  ;;  %v2472_v60 = vrot.slane %v2470_v53, 1 }
 0x117   : > { %4201 = vmatprep.subr.bf16.mxu1 %v4472_v39  ;;  %v1298_v19 = vrot.slane %v1296_v10, 1  ;;  %v1337_v28 = vsel %vm1325_vm8, %v1335_v8, %v1336_v14  ;;  %v1347_v62 = vrot.slane %v5394_v24, 1  ;;  %v1348_v63 = vrot.slane %v5398_v26, 1  ;;  %v4509_v14 = vld [vmem:[%s5227_s27 + $0x38] ss:$0 sps:$4 sm:$0x11]  }
 0x118   : > { %v1310_v42 = vrot.slane %v1308_v21, 1  ;;  %v2480_v10 = vshrl.u32 %v5420_v56, 16 }
 0x119   : > { %1908 = vmatmul.mubr.bf16.gmra.mxu0 %v5255_v61  ;;  %2214 = vmatmul.mubr.bf16.gmra.mxu1 %v5302_v45  ;;  %v1256_v61 = vsel %vm1220_vm9, %v1251_v29, %v1255_v25  ;;  %v1332_v45 = vrot.slane %v5320_v7, 1  ;;  %v4485_v25 = vld [vmem:[#allocation6 + $0x1e0] sm:$0xff]   ;;  %v1299_v29 = vor.u32 %v1298_v19, %v1294_v15 }
 0x11a   : > { %1915 = vmatprep.mubr.bf16.mxu0 %v1589_v23  ;;  %2221 = vmatprep.mubr.bf16.mxu1 %v1256_v61  ;;  %v1339_v23 = vrot.slane %v5349_v36, 1  ;;  %v4486_v61 = vld [vmem:[#allocation6 + $0x1a0] sm:$0xff]   ;;  %v1311_v50 = vor.u32 %v1310_v42, %v1306_v35  ;;  %v4512_v35 = vld [vmem:[#allocation8 + $0x28] sm:$0xff]  }
 0x11b   : > { %4202 = vmatpush3.bf16.msra.mxu1 %v4472_v39  ;;  %v1345_v39 = vrot.slane %v5381_v52, 1  ;;  %v1304_v36 = vsel %vm1220_vm9, %v1299_v29, %v1303_v30  ;;  %v1349_v52 = vsel %vm1325_vm8, %v1347_v62, %v1348_v63  ;;  %v5449_v29 = vld [vmem:[%s5227_s27 + $0x3c] sm:$0xff]   ;;  %v4511_v30 = vld [vmem:[%s5227_s27 + $0x44] ss:$0 sps:$4 sm:$0x11]  }
 0x11c   : > { %4203 = vmatprep.subr.bf16.mxu1 %v4476_v47  ;;  %v1340_v31 = vsel %vm1325_vm8, %v1338_v16, %v1339_v23  ;;  %v1316_v34 = vsel %vm1220_vm9, %v1311_v50, %v1315_v46  ;;  %v2578_v23 = vrot.slane %v4509_v14, 1  ;;  %v4517_v50 = vld [vmem:[%s5227_s27 + $0x5c] ss:$0 sps:$4 sm:$0x11]  }
 0x11d   : > { %v4513_v46 = vld [vmem:[#allocation8 + $0x20] sm:$0xff]  }
 0x11f   : > { %4204 = vmatpush3.bf16.msra.mxu1 %v4476_v47  ;;  %v4503_v47 = vld [vmem:[%s5227_s27 + $0x20] ss:$0 sps:$4 sm:$0x11]  }
 0x120   : > { %4205 = vmatprep.subr.bf16.mxu1 %v4483_v32  ;;  %v2475_v55 = vshll.u32 %v4503_v47, 16 }
 0x121   : > { %1916 = vmatmul.mubr.bf16.gmra.mxu0 %v5268_v13  ;;  %2222 = vmatmul.mubr.bf16.gmra.mxu1 %v5320_v7  ;;  %v5364_v13 = vld [vmem:[%s5227_s27 + $0x44] ss:$0 sps:$4 sm:$0x11]   ;;  %v1334_v7 = vsel %vm1325_vm8, %v1332_v45, %v1333_v4  ;;  %v2482_v45 = vshll.u32 %v5420_v56, 16 }
 0x122   : > { %1923 = vmatprep.mubr.bf16.mxu0 %v1601_v43  ;;  %2229 = vmatprep.mubr.bf16.mxu1 %v1268_v49  ;;  %v1289_v0 = vshll.u32 %v5364_v13, 16  ;;  %v1342_v37 = vrot.slane %v5364_v13, 1  ;;  %v4501_v43 = vld [vmem:[#allocation6 + $0x200] sm:$0xff]   ;;  %v4491_v49 = vld [vmem:[#allocation6 + $0x198] sm:$0xff]   ;;  %v1346_v13 = vsel %vm1325_vm8, %v1344_v38, %v1345_v39  ;;  %v4498_v4 = vld [vmem:[#allocation6 + $0x188] sm:$0xff]   ;;  %v2506_v38 = vshll.u32 %v5449_v29, 16 }
 0x123   : > { %4206 = vmatpush3.bf16.msra.mxu1 %v4483_v32  ;;  %v4496_v32 = vld [vmem:[#allocation6 + $0x1c8] sm:$0xff]   ;;  %v2580_v39 = vrot.slane %v5449_v29, 1 }
 0x124   : > { %v1291_v9 = vrot.slane %v1289_v0, 1  ;;  %4207 = vmatprep.subr.bf16.mxu1 %v4490_v11  ;;  %v1343_v48 = vsel %vm1325_vm8, %v1341_v33, %v1342_v37  ;;  %v4515_v33 = vld [vmem:[%s5227_s27 + $0x50] ss:$0 sps:$4 sm:$0x11]  }
 0x126   : > { %v1292_v18 = vsel %vm1220_vm9, %v1287_v1, %v1291_v9  ;;  %v4499_v1 = vld [vmem:[#allocation6 + $0x1c0] sm:$0xff]  }
 0x127   : > { %4208 = vmatpush3.bf16.msra.mxu1 %v4490_v11  ;;  %v2484_v11 = vrot.slane %v2482_v45, 1 }
 0x128   : > { %4209 = vmatprep.subr.bf16.mxu1 %v4497_v27 }
 0x129   : > { %1924 = vmatmul.mubr.bf16.gmra.mxu0 %v5276_v20  ;;  %2230 = vmatmul.mubr.bf16.gmra.mxu1 %v5334_v2  ;;  %v4477_v20 = vld [vmem:[#allocation6 + $0x1b8] sm:$0xff]   ;;  %v4484_v2 = vld [vmem:[#allocation6 + $0x1a8] sm:$0xff]   ;;  %v2485_v15 = vor.u32 %v2484_v11, %v2480_v10 }
 0x12a   : > { %4181 = vmatprep.mubr.bf16.mxu0 %v1328_v57  ;;  %2237 = vmatprep.mubr.bf16.mxu1 %v1280_v3  ;;  %v5422_v57 = vld [vmem:[#allocation8 + $0x38] sm:$0xff]   ;;  %v2477_v3 = vrot.slane %v2475_v55, 1 }
 0x12b   : > { %4210 = vmatpush3.bf16.msra.mxu1 %v4497_v27  ;;  %v2499_v27 = vshll.u32 %v4509_v14, 16 }
 0x12c   : > { %4211 = vmatprep.subr.bf16.mxu1 %v4501_v43 }
 0x12f   : > { %4212 = vmatpush3.bf16.msra.mxu1 %v4501_v43  ;;  %v2504_v43 = vshrl.u32 %v5449_v29, 16 }
 0x130   : > { %4229 = vmatprep.subr.bf16.mxu1 %v5422_v57 }
 0x131   : > { %4182 = vmatmul.mubr.bf16.vlgmr.msra.gmra.mxu0 %v1331_v54  ;;  %2238 = vmatmul.mubr.bf16.gmra.mxu1 %v5346_v40  ;;  %v4489_v40 = vld [vmem:[#allocation6 + $0x1d8] sm:$0xff]   ;;  %v2571_v54 = vrot.slane %v5412_v44, 1 }
 0x132   : > { %4038 = vmatpush3.bf16.msra.mxu0 %v4477_v20  ;;  %4185 = vmatprep.mubr.bf16.mxu0 %v1334_v7  ;;  %v4505_v20 = vld [vmem:[%s5227_s27 + $0x2c] ss:$0 sps:$4 sm:$0x11]  }
 0x133   : > { %4039 = vmatprep.subr.bf16.mxu0 %v4478_v6  ;;  %2245 = vmatprep.mubr.bf16.mxu1 %v1292_v18  ;;  %v2572_v6 = vrot.slane %v4503_v47, 1  ;;  %v2487_v7 = vshll.u32 %v4505_v20, 16  ;;  %v2574_v18 = vrot.slane %v5420_v56, 1  ;;  %v2575_v19 = vrot.slane %v4505_v20, 1 }
 0x134   : > { %v2511_v47 = vshll.u32 %v4511_v30, 16  ;;  %v5489_v20 = vld [vmem:[%s5227_s27 + $0x74] ss:$0 sps:$4 sm:$0x11]  }
 0x135   : > { %v2573_v8 = vsel %vm1325_vm8, %v2571_v54, %v2572_v6  ;;  %v2489_v16 = vrot.slane %v2487_v7, 1  ;;  %v2593_v11 = vrot.slane %v5489_v20, 1  ;;  %v4524_v7 = vld [vmem:[#allocation8 + $0x8] sm:$0xff]  }
 0x136   : > { %4040 = vmatpush3.bf16.msra.mxu0 %v4479_v12  ;;  %v4500_v12 = vld [vmem:[#allocation6 + $0x180] sm:$0xff]   ;;  %v2513_v55 = vrot.slane %v2511_v47, 1 }
 0x137   : > { %4041 = vmatprep.subr.bf16.mxu0 %v4482_v17 }
 0x139   : > { %4186 = vmatmul.mubr.bf16.gmra.mxu0 %v1337_v28  ;;  %2246 = vmatmul.mubr.bf16.gmra.mxu1 %v5361_v58  ;;  %v2468_v58 = vshrl.u32 %v5412_v44, 16  ;;  %v4507_v28 = vld [vmem:[#allocation8 + $0x30] sm:$0xff]  }
 0x13a   : > { %4042 = vmatpush3.bf16.msra.mxu0 %v4484_v2  ;;  %4189 = vmatprep.mubr.bf16.mxu0 %v1340_v31  ;;  %v5454_v31 = vld [vmem:[%s5227_s27 + $0x48] sm:$0xff]  }
 0x13b   : > { %4043 = vmatprep.subr.bf16.mxu0 %v4485_v25  ;;  %2253 = vmatprep.mubr.bf16.mxu1 %v1304_v36  ;;  %v2473_v0 = vor.u32 %v2472_v60, %v2468_v58  ;;  %v2490_v25 = vsel %vm1220_vm9, %v2485_v15, %v2489_v16  ;;  %v2583_v41 = vrot.slane %v5454_v31, 1  ;;  %v2584_v36 = vrot.slane %v4515_v33, 1  ;;  %v4518_v60 = vld [vmem:[#allocation8 + $0x18] sm:$0xff]  }
 0x13c   : > { %v2516_v63 = vshrl.u32 %v5454_v31, 16  ;;  %v2535_v16 = vshll.u32 %v4517_v50, 16 }
 0x13d   : > { %v2478_v9 = vsel %vm1220_vm9, %v2473_v0, %v2477_v3  ;;  %v2585_v53 = vsel %vm1325_vm8, %v2583_v41, %v2584_v36  ;;  %v2523_v3 = vshll.u32 %v4515_v33, 16  ;;  %v3119_v41 = vld [vmem:[%s5493_s12 + $0x40] sm:$0xff]  ;;  %v3120_v36 = vld [vmem:[%s5493_s12 + $0x48] sm:$0xff] }
 0x13e   : > { %4044 = vmatpush3.bf16.msra.mxu0 %v4486_v61  ;;  %v2501_v61 = vrot.slane %v2499_v27, 1  ;;  %v3115_v27 = vld [vmem:[%s5493_s12 + $0x20] sm:$0xff] }
 0x13f   : > { %4045 = vmatprep.subr.bf16.mxu0 %v4489_v40  ;;  %v2581_v40 = vrot.slane %v4511_v30, 1 }
 0x141   : > { %4190 = vmatmul.mubr.bf16.gmra.mxu0 %v1343_v48  ;;  %2254 = vmatmul.mubr.bf16.gmra.mxu1 %v5378_v5  ;;  %v5436_v5 = vld [vmem:[%s5227_s27 + $0x30] sm:$0xff]   ;;  %v2582_v48 = vsel %vm1325_vm8, %v2580_v39, %v2581_v40 }
 0x142   : > { %4046 = vmatpush3.bf16.msra.mxu0 %v4491_v49  ;;  %4193 = vmatprep.mubr.bf16.mxu0 %v1346_v13  ;;  %v2494_v17 = vshll.u32 %v5436_v5, 16  ;;  %v2577_v22 = vrot.slane %v5436_v5, 1  ;;  %v2492_v2 = vshrl.u32 %v5436_v5, 16  ;;  %v5466_v49 = vld [vmem:[%s5227_s27 + $0x54] sm:$0xff]  }
 0x143   : > { %4047 = vmatprep.subr.bf16.mxu0 %v4492_v51  ;;  %2261 = vmatprep.mubr.bf16.mxu1 %v1316_v34  ;;  %v5471_v51 = vld [vmem:[%s5227_s27 + $0x60] sm:$0xff]   ;;  %v5474_v13 = vld [vmem:[%s5227_s27 + $0x68] ss:$0 sps:$4 sm:$0x11]   ;;  %v2528_v14 = vshrl.u32 %v5466_v49, 16  ;;  %v3117_v40 = vld [vmem:[%s5493_s12 + $0x30] sm:$0xff] }
 0x144   : > { %v2496_v26 = vrot.slane %v2494_v17, 1  ;;  %v2579_v21 = vsel %vm1325_vm8, %v2577_v22, %v2578_v23  ;;  %v2590_v34 = vrot.slane %v5474_v13, 1  ;;  %v2537_v23 = vrot.slane %v2535_v16, 1 }
 0x146   : > { %4048 = vmatpush3.bf16.msra.mxu0 %v4493_v59  ;;  %v2497_v37 = vor.u32 %v2496_v26, %v2492_v2  ;;  %v2587_v59 = vrot.slane %v4517_v50, 1  ;;  %v2542_v2 = vshll.u32 %v5471_v51, 16  ;;  %v3114_v26 = vld [vmem:[%s5493_s12 + $0x18] sm:$0xff] }
 0x147   : > { %4049 = vmatprep.subr.bf16.mxu0 %v4496_v32  ;;  %v2589_v32 = vrot.slane %v5471_v51, 1 }
 0x148   : > { %v2502_v42 = vsel %vm1220_vm9, %v2497_v37, %v2501_v61  ;;  %v2544_v30 = vrot.slane %v2542_v2, 1 }
 0x149   : > { %4194 = vmatmul.mubr.bf16.gmra.mxu0 %v1349_v52  ;;  %2262 = vmatmul.mubr.bf16.gmra.mxu1 %v5394_v24  ;;  %v2576_v24 = vsel %vm1325_vm8, %v2574_v18, %v2575_v19  ;;  %v4519_v52 = vld [vmem:[#allocation8 + $0x10] sm:$0xff]   ;;  %v2591_v54 = vsel %vm1325_vm8, %v2589_v32, %v2590_v34  ;;  %v4525_v19 = vld [vmem:[#allocation8] sm:$0xff]  }
 0x14a   : > { %4050 = vmatpush3.bf16.msra.mxu0 %v4498_v4  ;;  %2828 = vmatprep.mubr.bf16.mxu0 %v2478_v9  ;;  %v5486_v4 = vld [vmem:[%s5227_s27 + $0x6c] sm:$0xff]   ;;  %v2530_v9 = vshll.u32 %v5466_v49, 16 }
 0x14b   : > { %4051 = vmatprep.subr.bf16.mxu0 %v4499_v1  ;;  %4213 = vmatprep.mubr.bf16.mxu1 %v2573_v8  ;;  %v2525_v1 = vrot.slane %v2523_v3, 1  ;;  %v2592_v10 = vrot.slane %v5486_v4, 1  ;;  %v2554_v39 = vshll.u32 %v5486_v4, 16 }
 0x14c   : > { %v2532_v15 = vrot.slane %v2530_v9, 1 }
 0x14d   : > { %v2594_v17 = vsel %vm1325_vm8, %v2592_v10, %v2593_v11 }
 0x14e   : > { %4052 = vmatpush3.bf16.msra.mxu0 %v4500_v12  ;;  %v3112_v12 = vld [vmem:[%s5493_s12 + $0x8] sm:$0xff]  ;;  %v2533_v22 = vor.u32 %v2532_v15, %v2528_v14 }
 0x151   : > { %2829 = vmatmul.mubr.bf16.vlgmr.msra.gmra.mxu0 %v5412_v44  ;;  %4214 = vmatmul.mubr.bf16.vlgmr.msra.gmra.mxu1 %v2576_v24  ;;  %v2508_v44 = vrot.slane %v2506_v38, 1  ;;  %v2538_v24 = vsel %vm1220_vm9, %v2533_v22, %v2537_v23 }
 0x152   : > { %2836 = vmatprep.mubr.bf16.mxu0 %v2490_v25  ;;  %4230 = vmatpush3.bf16.msra.mxu1 %v5422_v57  ;;  %v2586_v57 = vrot.slane %v5466_v49, 1  ;;  %v3113_v25 = vld [vmem:[%s5493_s12 + $0x10] sm:$0xff] }
 0x153   : > { %4217 = vmatprep.mubr.bf16.mxu1 %v2579_v21  ;;  %4231 = vmatprep.subr.bf16.mxu1 %v4507_v28  ;;  %v2509_v58 = vor.u32 %v2508_v44, %v2504_v43  ;;  %v2547_v21 = vshll.u32 %v5474_v13, 16  ;;  %v3128_v33 = vpack.c.bf16 %v3114_v26, %v3113_v25  ;;  %v2556_v43 = vrot.slane %v2554_v39, 1  ;;  %v3122_v13 = vld [vmem:[%s5493_s12 + $0x58] sm:$0xff] }
 0x154   : > { %v2588_v45 = vsel %vm1325_vm8, %v2586_v57, %v2587_v59  ;;  %v2559_v44 = vshll.u32 %v5489_v20, 16 }
 0x155   : > { %v2514_v62 = vsel %vm1220_vm9, %v2509_v58, %v2513_v55  ;;  %v2549_v38 = vrot.slane %v2547_v21, 1  ;;  %v3123_v58 = vld [vmem:[%s5493_s12 + $0x60] sm:$0xff]  ;;  %v3124_v55 = vld [vmem:[%s5493_s12 + $0x68] sm:$0xff] }
 0x156   : > { %4232 = vmatpush3.bf16.msra.mxu1 %v4507_v28  ;;  %v3116_v28 = vld [vmem:[%s5493_s12 + $0x28] sm:$0xff]  ;;  %v3133_v59 = vpack.c.bf16 %v3124_v55, %v3123_v58 }
 0x157   : > { %4233 = vmatprep.subr.bf16.mxu1 %v4512_v35  ;;  %v3129_v37 = vpack.c.bf16 %v3116_v28, %v3115_v27 }
 0x159   : > { %2837 = vmatmul.mubr.bf16.gmra.mxu0 %v5420_v56  ;;  %v2518_v56 = vshll.u32 %v5454_v31, 16  ;;  %4218 = vmatmul.mubr.bf16.gmra.mxu1 %v2582_v48  ;;  %v3131_v48 = vpack.c.bf16 %v3120_v36, %v3119_v41 }
 0x15a   : > { %2844 = vmatprep.mubr.bf16.mxu0 %v2502_v42  ;;  %4234 = vmatpush3.bf16.msra.mxu1 %v4512_v35  ;;  %v3118_v35 = vld [vmem:[%s5493_s12 + $0x38] sm:$0xff] }
 0x15b   : > { %4221 = vmatprep.mubr.bf16.mxu1 %v2585_v53  ;;  %4235 = vmatprep.subr.bf16.mxu1 %v4513_v46  ;;  %v2520_v0 = vrot.slane %v2518_v56, 1  ;;  %v3130_v47 = vpack.c.bf16 %v3118_v35, %v3117_v40  ;;  %v3121_v53 = vld [vmem:[%s5493_s12 + $0x50] sm:$0xff] }
 0x15c   : > { %v3132_v57 = vpack.c.bf16 %v3122_v13, %v3121_v53 }
 0x15d   : > { %v2521_v6 = vor.u32 %v2520_v0, %v2516_v63 }
 0x15e   : > { %4236 = vmatpush3.bf16.msra.mxu1 %v4513_v46  ;;  %v2561_v46 = vrot.slane %v2559_v44, 1 }
 0x15f   : > { %4237 = vmatprep.subr.bf16.mxu1 %v4518_v60  ;;  %v2526_v8 = vsel %vm1220_vm9, %v2521_v6, %v2525_v1 }
 0x161   : > { %2845 = vmatmul.mubr.bf16.gmra.mxu0 %v5436_v5  ;;  %4222 = vmatmul.mubr.bf16.gmra.mxu1 %v2588_v45  ;;  %v3111_v5 = vld [vmem:[%s5493_s12] sm:$0xff] }
 0x162   : > { %2852 = vmatprep.mubr.bf16.mxu0 %v2514_v62  ;;  %4238 = vmatpush3.bf16.msra.mxu1 %v4518_v60  ;;  %v3127_v18 = vpack.c.bf16 %v3112_v12, %v3111_v5  ;;  %v3126_v60 = vld [vmem:[%s5493_s12 + $0x78] sm:$0xff] }
 0x163   : > { %4225 = vmatprep.mubr.bf16.mxu1 %v2591_v54  ;;  %4239 = vmatprep.subr.bf16.mxu1 %v4519_v52 }
 0x166   : > { %4240 = vmatpush3.bf16.msra.mxu1 %v4519_v52 }
 0x167   : > { %4241 = vmatprep.subr.bf16.mxu1 %v4524_v7 }
 0x169   : > { %2853 = vmatmul.mubr.bf16.gmra.mxu0 %v5449_v29  ;;  %4226 = vmatmul.mubr.bf16.gmra.mxu1 %v2594_v17  ;;  %v2540_v29 = vshrl.u32 %v5471_v51, 16 }
 0x16a   : > { %2860 = vmatprep.mubr.bf16.mxu0 %v2526_v8  ;;  %4242 = vmatpush3.bf16.msra.mxu1 %v4524_v7 }
 0x16b   : > { %4245 = vmatprep.mubr.bf16.mxu1 %v3127_v18  ;;  %4243 = vmatprep.subr.bf16.mxu1 %v4525_v19  ;;  %v2545_v61 = vor.u32 %v2544_v30, %v2540_v29 }
 0x16d   : > { %v2550_v42 = vsel %vm1220_vm9, %v2545_v61, %v2549_v38 }
 0x16e   : > { %4244 = vmatpush3.bf16.msra.mxu1 %v4525_v19 }
 0x171   : > { %2861 = vmatmul.mubr.bf16.gmra.mxu0 %v5454_v31  ;;  %4246 = vmatmul.mubr.bf16.vlgmr.msra.gmra.mxu1 %v3128_v33  ;;  %v2552_v31 = vshrl.u32 %v5486_v4, 16 }
 0x172   : > { %2868 = vmatprep.mubr.bf16.mxu0 %v2538_v24  ;;  %4249 = vmatprep.mubr.bf16.mxu1 %v3129_v37 }
 0x173   : > { %v2557_v50 = vor.u32 %v2556_v43, %v2552_v31 }
 0x175   : > { %v2562_v56 = vsel %vm1220_vm9, %v2557_v50, %v2561_v46 }
 0x179   : > { %2869 = vmatmul.mubr.bf16.gmra.mxu0 %v5466_v49  ;;  %4250 = vmatmul.mubr.bf16.gmra.mxu1 %v3130_v47  ;;  %v3125_v49 = vld [vmem:[%s5493_s12 + $0x70] sm:$0xff]  ;;  %s5901_s12 = sld [smem:[#allocation27_spill]] }
 0x17a   : > { %2876 = vmatprep.mubr.bf16.mxu0 %v2550_v42  ;;  %4253 = vmatprep.mubr.bf16.mxu1 %v3131_v48  ;;  %v3134_v32 = vpack.c.bf16 %v3126_v60, %v3125_v49 }
 0x17f   : > { %s5902_s7 = smov %s5901_s12  ;;  %s5740_s19 = scalar_lea.hbm %s5901_s12, %s3774_s11 }
 0x181   : > { %2877 = vmatmul.mubr.bf16.gmra.mxu0 %v5471_v51  ;;  %4254 = vmatmul.mubr.bf16.gmra.mxu1 %v3132_v57 }
 0x182   : > { %2884 = vmatprep.mubr.bf16.mxu0 %v2562_v56  ;;  %4257 = vmatprep.mubr.bf16.mxu1 %v3133_v59 }
 0x189   : > { %2885 = vmatmul.mubr.bf16.gmra.mxu0 %v5486_v4  ;;  %4258 = vmatmul.mubr.bf16.gmra.mxu1 %v3134_v32 }
 0x1b1   : > { %v3893_v34 = vpop.f32.mrf.mxu0  ;;  %v4151_v62 = vpop.f32.mrf.mxu1 }
 0x1b3   : > { %v3894_v63 = vpop.f32.mrf.mxu0  ;;  %v1966_v0 = vpop.f32.mrf.mxu1 }
 0x1b4   : > { %v3895_v3 = vadd.f32 %v3894_v63, %v3893_v34 }
 0x1b5   : > { %v3896_v45 = vpop.f32.mrf.mxu0  ;;  %v4152_v20 = vpop.f32.mrf.mxu1 }
 0x1b6   : > { %v1967_v52 = vadd.f32 %v3895_v3, %v1966_v0 }
 0x1b7   : > { %v3897_v54 = vpop.f32.mrf.mxu0  ;;  %v1969_v51 = vpop.f32.mrf.mxu1 }
 0x1b8   : > { %v3898_v6 = vadd.f32 %v3897_v54, %v3896_v45 }
 0x1b9   : > { %v3899_v1 = vpop.f32.mrf.mxu0  ;;  %v4155_v9 = vpop.f32.mrf.mxu1 }
 0x1ba   : > { %v5531_v10 = vadd.f32 %v3898_v6, %v1969_v51 }
 0x1bb   : > { %v3900_v11 = vpop.f32.mrf.mxu0  ;;  %v1982_v7 = vpop.f32.mrf.mxu1 }
 0x1bc   : > { %v3901_v5 = vadd.f32 %v3900_v11, %v3899_v1 }
 0x1bd   : > { %v3902_v4 = vpop.f32.mrf.mxu0  ;;  %v4156_v12 = vpop.f32.mrf.mxu1 }
 0x1be   : > { %v1975_v8 = vadd.f32 %v4151_v62, %v3901_v5 }
 0x1bf   : > { %v3903_v14 = vpop.f32.mrf.mxu0  ;;  %v1985_v15 = vpop.f32.mrf.mxu1 }
 0x1c0   : > { %v3904_v16 = vadd.f32 %v3903_v14, %v3902_v4 }
 0x1c1   : > { %v3905_v17 = vpop.f32.mrf.mxu0  ;;  %v4159_v18 = vpop.f32.mrf.mxu1 }
 0x1c2   : > { %v5533_v19 = vadd.f32 %v4152_v20, %v3904_v16 }
 0x1c3   : > { %v3906_v22 = vpop.f32.mrf.mxu0  ;;  %v1998_v23 = vpop.f32.mrf.mxu1 }
 0x1c4   : > { %v3907_v2 = vadd.f32 %v3906_v22, %v3905_v17 }
 0x1c5   : > { %v3908_v25 = vpop.f32.mrf.mxu0  ;;  %v4160_v26 = vpop.f32.mrf.mxu1 }
 0x1c6   : > { %v1983_v27 = vadd.f32 %v3907_v2, %v1982_v7 }
 0x1c7   : > { %v3909_v28 = vpop.f32.mrf.mxu0  ;;  %v2001_v24 = vpop.f32.mrf.mxu1 }
 0x1c8   : > { %v3910_v29 = vadd.f32 %v3909_v28, %v3908_v25 }
 0x1c9   : > { %v3911_v30 = vpop.f32.mrf.mxu0  ;;  %v4163_v33 = vpop.f32.mrf.mxu1 }
 0x1ca   : > { %v5535_v21 = vadd.f32 %v3910_v29, %v1985_v15 }
 0x1cb   : > { %v3912_v37 = vpop.f32.mrf.mxu0  ;;  %v2014_v38 = vpop.f32.mrf.mxu1 }
 0x1cc   : > { %v3913_v61 = vadd.f32 %v3912_v37, %v3911_v30 }
 0x1cd   : > { %v3914_v39 = vpop.f32.mrf.mxu0  ;;  %v4164_v35 = vpop.f32.mrf.mxu1 }
 0x1ce   : > { %v1991_v40 = vadd.f32 %v4155_v9, %v3913_v61 }
 0x1cf   : > { %v3915_v41 = vpop.f32.mrf.mxu0  ;;  %v2017_v42 = vpop.f32.mrf.mxu1 }
 0x1d0   : > { %v3916_v36 = vadd.f32 %v3915_v41, %v3914_v39 }
 0x1d1   : > { %v3917_v43 = vpop.f32.mrf.mxu0  ;;  %v3973_v47 = vpop.f32.mrf.mxu1 }
 0x1d2   : > { %v5537_v31 = vadd.f32 %v4156_v12, %v3916_v36 }
 0x1d3   : > { %v3918_v44 = vpop.f32.mrf.mxu0  ;;  %v3974_v53 = vpop.f32.mrf.mxu1 }
 0x1d4   : > { %v3919_v48 = vadd.f32 %v3918_v44, %v3917_v43  ;;  %v3975_v13 = vadd.f32 %v3974_v53, %v3973_v47 }
 0x1d5   : > { %v3920_v50 = vpop.f32.mrf.mxu0  ;;  %v5539_v55 = vpop.f32.mrf.mxu1 }
 0x1d6   : > { %v1999_v46 = vadd.f32 %v3919_v48, %v1998_v23  ;;  %v5541_v59 = vadd.f32 %v3975_v13, %v1967_v52 }
 0x1d7   : > { %v3921_v58 = vpop.f32.mrf.mxu0  ;;  %v5545_v60 = vpop.f32.mrf.mxu1 }
 0x1d8   : > { %v3922_v56 = vadd.f32 %v3921_v58, %v3920_v50 }
 0x1d9   : > { %v3923_v57 = vpop.f32.mrf.mxu0  ;;  %v3979_v34 = vpop.f32.mrf.mxu1 }
 0x1da   : > { %v5543_v49 = vadd.f32 %v3922_v56, %v2001_v24 }
 0x1db   : > { %v3924_v32 = vpop.f32.mrf.mxu0  ;;  %v3980_v3 = vpop.f32.mrf.mxu1 }
 0x1dc   : > { %v3925_v62 = vadd.f32 %v3924_v32, %v3923_v57  ;;  %v3981_v45 = vadd.f32 %v3980_v3, %v3979_v34 }
 0x1dd   : > { %v3926_v63 = vpop.f32.mrf.mxu0  ;;  %v5547_v54 = vpop.f32.mrf.mxu1 }
 0x1de   : > { %v2007_v0 = vadd.f32 %v4159_v18, %v3925_v62  ;;  %v5549_v1 = vadd.f32 %v3981_v45, %v1975_v8 }
 0x1df   : > { %v3927_v20 = vpop.f32.mrf.mxu0  ;;  %v5553_v9 = vpop.f32.mrf.mxu1 }
 0x1e0   : > { %v3928_v51 = vadd.f32 %v3927_v20, %v3926_v63 }
 0x1e1   : > { %v3929_v6 = vpop.f32.mrf.mxu0  ;;  %v3985_v7 = vpop.f32.mrf.mxu1 }
 0x1e2   : > { %v5551_v52 = vadd.f32 %v4160_v26, %v3928_v51 }
 0x1e3   : > { %v3930_v11 = vpop.f32.mrf.mxu0  ;;  %v3986_v14 = vpop.f32.mrf.mxu1 }
 0x1e4   : > { %v3931_v5 = vadd.f32 %v3930_v11, %v3929_v6  ;;  %v3987_v15 = vadd.f32 %v3986_v14, %v3985_v7 }
 0x1e5   : > { %v3932_v4 = vpop.f32.mrf.mxu0  ;;  %v5555_v17 = vpop.f32.mrf.mxu1 }
 0x1e6   : > { %v2015_v12 = vadd.f32 %v3931_v5, %v2014_v38  ;;  %v5557_v23 = vadd.f32 %v3987_v15, %v1983_v27 }
 0x1e7   : > { %v3933_v16 = vpop.f32.mrf.mxu0  ;;  %v5561_v2 = vpop.f32.mrf.mxu1 }
 0x1e8   : > { %v3934_v18 = vadd.f32 %v3933_v16, %v3932_v4 }
 0x1e9   : > { %v3935_v22 = vpop.f32.mrf.mxu0  ;;  %v3991_v26 = vpop.f32.mrf.mxu1 }
 0x1ea   : > { %v5559_v8 = vadd.f32 %v3934_v18, %v2017_v42 }
 0x1eb   : > { %v3936_v25 = vpop.f32.mrf.mxu0  ;;  %v3992_v30 = vpop.f32.mrf.mxu1 }
 0x1ec   : > { %v3937_v28 = vadd.f32 %v3936_v25, %v3935_v22  ;;  %v3993_v37 = vadd.f32 %v3992_v30, %v3991_v26 }
 0x1ed   : > { %v3938_v24 = vpop.f32.mrf.mxu0  ;;  %v5563_v38 = vpop.f32.mrf.mxu1 }
 0x1ee   : > { %v2023_v29 = vadd.f32 %v4163_v33, %v3937_v28  ;;  %v5567_v36 = vadd.f32 %v3993_v37, %v1991_v40 }
 0x1ef   : > { %v3939_v61 = vpop.f32.mrf.mxu0  ;;  %v5569_v42 = vpop.f32.mrf.mxu1 }
 0x1f0   : > { %v3940_v39 = vadd.f32 %v3939_v61, %v3938_v24 }
 0x1f1   : > { %v5565_v41 = vpop.f32.mrf.mxu0  ;;  %v3997_v44 = vpop.f32.mrf.mxu1 }
 0x1f2   : > { %v2026_v27 = vadd.f32 %v4164_v35, %v3940_v39 }
 0x1f3   : > { %v2304_v43 = vpop.f32.mrf.mxu0  ;;  %v3998_v48 = vpop.f32.mrf.mxu1 }
 0x1f4   : > { %v3999_v50 = vadd.f32 %v3998_v48, %v3997_v44 }
 0x1f5   : > { %v5571_v47 = vpop.f32.mrf.mxu0  ;;  %v5573_v53 = vpop.f32.mrf.mxu1 }
 0x1f6   : > { %v5577_v58 = vadd.f32 %v3999_v50, %v1999_v46 }
 0x1f7   : > { %v2307_v33 = vpop.f32.mrf.mxu0  ;;  %v5579_v56 = vpop.f32.mrf.mxu1 }
 0x1f9   : > { %v5575_v13 = vpop.f32.mrf.mxu0  ;;  %v4003_v35 = vpop.f32.mrf.mxu1 }
 0x1fb   : > { %v5581_v40 = vpop.f32.mrf.mxu0  ;;  %v4004_v32 = vpop.f32.mrf.mxu1 }
 0x1fc   : > { %v4005_v34 = vadd.f32 %v4004_v32, %v4003_v35  ;;  %v3978_v32 = vadd.f32 %v5545_v60, %v5539_v55  ;;  %v3984_v55 = vadd.f32 %v5553_v9, %v5547_v54  ;;  %v5622_v60 = vld [vmem:[%s5897_s16] ss:$0 sm:$0xff]  ;;  %v2313_v54 = vadd.f32 %v5565_v41, %v5549_v1  ;;  %s3341_s16 = sshll.u32 %s4995_s23, 4  ;;  %s5777_s16 = int_to_ptr.vmem [resolvable:$true] %s3341_s16 }
 0x1fd   : > { %v5583_v57 = vpop.f32.mrf.mxu0  ;;  %v5587_v63 = vpop.f32.mrf.mxu1 }
 0x1fe   : > { %v2248_v3 = vadd.f32 %v4005_v34, %v2007_v0  ;;  %v2219_v9 = vadd.f32 %v3984_v55, %v5533_v19 }
 0x1ff   : > { %v5585_v62 = vpop.f32.mrf.mxu0  ;;  %v5589_v20 = vpop.f32.mrf.mxu1 }
 0x201   : > { %v4191_v45 = vpop.f32.mrf.mxu0  ;;  %v4009_v6 = vpop.f32.mrf.mxu1 }
 0x202   : > { %v5591_v51 = vadd.f32 %v4191_v45, %v2248_v3 }
 0x203   : > { %v5593_v46 = vpop.f32.mrf.mxu0  ;;  %v4010_v7 = vpop.f32.mrf.mxu1 }
 0x204   : > { %v4011_v5 = vadd.f32 %v4010_v7, %v4009_v6 }
 0x205   : > { %v5595_v11 = vpop.f32.mrf.mxu0  ;;  %v5599_v14 = vpop.f32.mrf.mxu1 }
 0x206   : > { %v5601_v16 = vadd.f32 %v4011_v5, %v2015_v12 }
 0x207   : > { %v5597_v4 = vpop.f32.mrf.mxu0  ;;  %v5603_v0 = vpop.f32.mrf.mxu1 }
 0x209   : > { %v4195_v15 = vpop.f32.mrf.mxu0  ;;  %v4015_v22 = vpop.f32.mrf.mxu1 }
 0x20b   : > { %v5605_v18 = vpop.f32.mrf.mxu0  ;;  %v4016_v26 = vpop.f32.mrf.mxu1 }
 0x20c   : > { %v4017_v28 = vadd.f32 %v4016_v26, %v4015_v22  ;;  %v2305_v26 = vadd.f32 %v2304_v43, %v5541_v59 }
 0x20d   : > { %v4196_v25 = vpop.f32.mrf.mxu0  ;;  %v4018_v30 = vpop.f32.mrf.mxu1 }
 0x20e   : > { %v2264_v37 = vadd.f32 %v4017_v28, %v2023_v29 }
 0x20f   : > { %v5607_v24 = vpop.f32.mrf.mxu0  ;;  %v4019_v39 = vpop.f32.mrf.mxu1 }
 0x210   : > { %v5609_v44 = vadd.f32 %v4195_v15, %v2264_v37  ;;  %v4020_v48 = vadd.f32 %v4019_v39, %v4018_v30  ;;  %v2211_v15 = vadd.f32 %v3978_v32, %v5531_v10 }
 0x211   : > { %v4053_v61 = vpop.f32.mrf.mxu0  ;;  %v4215_v35 = vpop.f32.mrf.mxu1 }
 0x212   : > { %v2267_v34 = vadd.f32 %v4020_v48, %v2026_v27  ;;  %v2308_v37 = vadd.f32 %v2307_v33, %v2211_v15 }
 0x213   : > { %v4054_v50 = vpop.f32.mrf.mxu0  ;;  %v2927_v45 = vpop.f32.mrf.mxu1 }
 0x214   : > { %v4055_v12 = vadd.f32 %v4054_v50, %v4053_v61  ;;  %v5613_v6 = vadd.f32 %v4196_v25, %v2267_v34 }
 0x215   : > { %v4056_v3 = vpop.f32.mrf.mxu0  ;;  %v4216_v29 = vpop.f32.mrf.mxu1 }
 0x216   : > { %v2928_v7 = vadd.f32 %v4055_v12, %v2927_v45 }
 0x217   : > { %v4057_v5 = vpop.f32.mrf.mxu0  ;;  %v2930_v30 = vpop.f32.mrf.mxu1 }
 0x218   : > { %v4058_v22 = vadd.f32 %v4057_v5, %v4056_v3  ;;  %v2990_v61 = vadd.f32 %v2928_v7, %v2305_v26  ;;  %v2316_v5 = vadd.f32 %v5571_v47, %v2219_v9 }
 0x219   : > { %v4059_v28 = vpop.f32.mrf.mxu0  ;;  %v4219_v25 = vpop.f32.mrf.mxu1 }
 0x21a   : > { %v2931_v39 = vadd.f32 %v4058_v22, %v2930_v30  ;;  %v3013_v33 = vadd.f32 %v5622_v60, %v2990_v61 }
 0x21b   : > { %v4060_v50 = vpop.f32.mrf.mxu0  ;;  %v2943_v43 = vpop.f32.mrf.mxu1 }
 0x21c   : > { %v4061_v27 = vadd.f32 %v4060_v50, %v4059_v28  ;;  %v2991_v48 = vadd.f32 %v2931_v39, %v2308_v37  ;;  %v3990_v28 = vadd.f32 %v5561_v2, %v5555_v17 }
 0x21d   : > { %v4062_v59 = vpop.f32.mrf.mxu0  ;;  %v4220_v3 = vpop.f32.mrf.mxu1 }
 0x21e   : > { %v2936_v10 = vadd.f32 %v4215_v35, %v4061_v27  ;;  %v3014_v12 = vadd.f32 %v5622_v60, %v2991_v48  ;;  %v2227_v55 = vadd.f32 %v3990_v28, %v5535_v21 }
 0x21f   : > { %v4063_v32 = vpop.f32.mrf.mxu0  ;;  %v2946_v35 = vpop.f32.mrf.mxu1 }
 0x220   : > { %v4064_v34 = vadd.f32 %v4063_v32, %v4062_v59  ;;  %v3833_v45 = vpack.c.bf16 %v3014_v12, %v3013_v33  ;;  %v2992_v22 = vadd.f32 %v2936_v10, %v2313_v54  ;;  %v2324_v59 = vadd.f32 %v5585_v62, %v2227_v55 }
 0x221   : > { %v4065_v7 = vpop.f32.mrf.mxu0  ;;  %v5633_v1 = vpop.f32.mrf.mxu1 }
 0x222   : > { %v2939_v26 = vadd.f32 %v4216_v29, %v4064_v34  ;;  %3834 = vst [vmem:[%s4995_s23] sm:$0xff] %v3833_v45   ;;  %v3015_v41 = vadd.f32 %v5622_v60, %v2992_v22  ;;  %v2321_v29 = vadd.f32 %v5581_v40, %v5557_v23 }
 0x223   : > { %v4066_v15 = vpop.f32.mrf.mxu0  ;;  %v2959_v47 = vpop.f32.mrf.mxu1 }
 0x224   : > { %v2993_v30 = vadd.f32 %v2939_v26, %v2316_v5  ;;  %v4067_v37 = vadd.f32 %v4066_v15, %v4065_v7  ;;  %v2329_v5 = vadd.f32 %v5575_v13, %v5567_v36 }
 0x225   : > { %v4068_v19 = vpop.f32.mrf.mxu0  ;;  %v5640_v2 = vpop.f32.mrf.mxu1 }
 0x226   : > { %v3016_v61 = vadd.f32 %v5622_v60, %v2993_v30  ;;  %v2944_v39 = vadd.f32 %v4067_v37, %v2943_v43  ;;  %v3996_v43 = vadd.f32 %v5569_v42, %v5563_v38  ;;  %v5664_v37 = vld [vmem:[%s5898_s6] ss:$0 sm:$0xff]  ;;  %s4606_s6 = scalar_lea.vmem %s5742_s1, 2048 }
 0x227   : > { %v4069_v50 = vpop.f32.mrf.mxu0  ;;  %v2962_v12 = vpop.f32.mrf.mxu1  ;;  %p4607_p3 = scmp.ne.s32.totalorder %s5742_s1, %s4606_s6  ;;  %p4614_p6 = scmp.lt.s32.totalorder %s4612_s26, %s4606_s6 }
 0x228   : > { %v3838_v27 = vpack.c.bf16 %v3016_v61, %v3015_v41  ;;  %v4070_v17 = vadd.f32 %v4069_v50, %v4068_v19  ;;  %v2994_v10 = vadd.f32 %v2944_v39, %v2321_v29  ;;  %v2235_v22 = vadd.f32 %v3996_v43, %v5537_v31 }
 0x229   : > { %v4071_v48 = vpop.f32.mrf.mxu0  ;;  %v5646_v40 = vpop.f32.mrf.mxu1  ;;  %v4002_v31 = vadd.f32 %v5579_v56, %v5573_v53  ;;  %v2337_v53 = vadd.f32 %v5593_v46, %v5577_v58  ;;  %p4608_p12 = pnand %p4607_p3, %p5903_p10  ;;  %p4615_p5 = por %p4614_p6, %p4613_p4 }
 0x22a   : > { %3870 = vst [vmem:[%s4995_s23 + $0x8] sm:$0xff] %v3838_v27   ;;  %v2947_v33 = vadd.f32 %v4070_v17, %v2946_v35  ;;  %v3017_v9 = vadd.f32 %v5622_v60, %v2994_v10  ;;  %v2332_v15 = vadd.f32 %v5583_v57, %v2235_v22 }
 0x22b   : > { %v4072_v32 = vpop.f32.mrf.mxu0  ;;  %v5650_v62 = vpop.f32.mrf.mxu1  ;;  %v2243_v56 = vadd.f32 %v4002_v31, %v5543_v49  ;;  %v4008_v49 = vadd.f32 %v5589_v20, %v5587_v63  ;;  %p4609_p2 = pneg %p4608_p12 }
 0x22c   : > { %v2995_v54 = vadd.f32 %v2947_v33, %v2324_v59  ;;  %v4073_v23 = vadd.f32 %v4072_v32, %v4071_v48 }
 0x22d   : > { %v4074_v21 = vpop.f32.mrf.mxu0  ;;  %v5655_v26 = vpop.f32.mrf.mxu1  ;;  %v2251_v22 = vadd.f32 %v4008_v49, %v5551_v52  ;;  %p4616_p1 = pnand %p4615_p5, %p4609_p2 }
 0x22e   : > { %v3018_v34 = vadd.f32 %v5622_v60, %v2995_v54  ;;  %v2952_v45 = vadd.f32 %v4219_v25, %v4073_v23 }
 0x22f   : > { %v4075_v7 = vpop.f32.mrf.mxu0  ;;  %v5659_v25 = vpop.f32.mrf.mxu1 }
 0x230   : > { %v3843_v38 = vpack.c.bf16 %v3018_v34, %v3017_v9  ;;  %v4076_v42 = vadd.f32 %v4075_v7, %v4074_v21  ;;  %v2996_v28 = vadd.f32 %v2952_v45, %v2329_v5 }
 0x231   : > { %v4077_v35 = vpop.f32.mrf.mxu0  ;;  %v4247_v41 = vpop.f32.mrf.mxu1 }
 0x232   : > { %3871 = vst [vmem:[%s4995_s23 + $0x10] sm:$0xff] %v3843_v38   ;;  %v2955_v30 = vadd.f32 %v4220_v3, %v4076_v42  ;;  %v3249_v57 = vadd.f32 %v4247_v41, %v5664_v37  ;;  %v3019_v3 = vadd.f32 %v5622_v60, %v2996_v28 }
 0x233   : > { %v4078_v36 = vpop.f32.mrf.mxu0  ;;  %v3240_v29 = vpop.f32.mrf.mxu1 }
 0x234   : > { %v2997_v13 = vadd.f32 %v2955_v30, %v2332_v15  ;;  %v4079_v19 = vadd.f32 %v4078_v36, %v4077_v35  ;;  %3305 = vst [vmem:[%s4997_s17 + $0x10] sm:$0xff] %v3249_v57  ;;  %v3241_v55 = vadd.f32 %v5664_v37, %v3240_v29  ;;  %v2348_v30 = vadd.f32 %v5595_v11, %v2251_v22 }
 0x235   : > { %v4080_v61 = vpop.f32.mrf.mxu0  ;;  %v4248_v59 = vpop.f32.mrf.mxu1  ;;  %v2353_v29 = vadd.f32 %v5605_v18, %v5601_v16 }
 0x236   : > { %v3020_v39 = vadd.f32 %v5622_v60, %v2997_v13  ;;  %v2960_v50 = vadd.f32 %v4079_v19, %v2959_v47  ;;  %3303 = vst [vmem:[%s4997_s17] sm:$0xff] %v3241_v55  ;;  %v3252_v10 = vadd.f32 %v4248_v59, %v5664_v37  ;;  %v2340_v47 = vadd.f32 %v5597_v4, %v2243_v56 }
 0x237   : > { %v4081_v27 = vpop.f32.mrf.mxu0  ;;  %v3243_v54 = vpop.f32.mrf.mxu1  ;;  %v4014_v19 = vadd.f32 %v5603_v0, %v5599_v14 }
 0x238   : > { %v3848_v17 = vpack.c.bf16 %v3020_v39, %v3019_v3  ;;  %v4082_v48 = vadd.f32 %v4081_v27, %v4080_v61  ;;  %v2998_v32 = vadd.f32 %v2960_v50, %v2337_v53  ;;  %3306 = vst [vmem:[%s4997_s17 + $0x18] sm:$0xff] %v3252_v10  ;;  %v3244_v58 = vadd.f32 %v5664_v37, %v3243_v54 }
 0x239   : > { %v4083_v33 = vpop.f32.mrf.mxu0  ;;  %v4251_v9 = vpop.f32.mrf.mxu1  ;;  %v2259_v55 = vadd.f32 %v4014_v19, %v5559_v8 }
 0x23a   : > { %3872 = vst [vmem:[%s4995_s23 + $0x18] sm:$0xff] %v3848_v17   ;;  %v2963_v43 = vadd.f32 %v4082_v48, %v2962_v12  ;;  %3304 = vst [vmem:[%s4997_s17 + $0x8] sm:$0xff] %v3244_v58  ;;  %v3265_v34 = vadd.f32 %v4251_v9, %v5664_v37  ;;  %v3021_v12 = vadd.f32 %v5622_v60, %v2998_v32 }
 0x23b   : > { %v4084_v46 = vpop.f32.mrf.mxu0  ;;  %v3256_v5 = vpop.f32.mrf.mxu1  ;;  %v2356_v48 = vadd.f32 %v5607_v24, %v2259_v55 }
 0x23c   : > { %v2999_v23 = vadd.f32 %v2963_v43, %v2340_v47  ;;  %v4085_v21 = vadd.f32 %v4084_v46, %v4083_v33  ;;  %3309 = vst [vmem:[%s4997_s17 + $0x30] sm:$0xff] %v3265_v34  ;;  %v3257_v63 = vadd.f32 %v5664_v37, %v3256_v5 }
 0x23d   : > { %v4086_v4 = vpop.f32.mrf.mxu0  ;;  %v4252_v35 = vpop.f32.mrf.mxu1 }
 0x23e   : > { %v3022_v45 = vadd.f32 %v5622_v60, %v2999_v23  ;;  %v2968_v7 = vadd.f32 %v5633_v1, %v4085_v21  ;;  %3307 = vst [vmem:[%s4997_s17 + $0x20] sm:$0xff] %v3257_v63  ;;  %v3268_v15 = vadd.f32 %v4252_v35, %v5664_v37 }
 0x23f   : > { %v4087_v20 = vpop.f32.mrf.mxu0  ;;  %v3259_v31 = vpop.f32.mrf.mxu1 }
 0x240   : > { %v3853_v38 = vpack.c.bf16 %v3022_v45, %v3021_v12  ;;  %v4088_v42 = vadd.f32 %v4087_v20, %v4086_v4  ;;  %v3000_v1 = vadd.f32 %v2968_v7, %v5591_v51  ;;  %3310 = vst [vmem:[%s4997_s17 + $0x38] sm:$0xff] %v3268_v15  ;;  %v3260_v52 = vadd.f32 %v5664_v37, %v3259_v31 }
 0x241   : > { %v4089_v28 = vpop.f32.mrf.mxu0  ;;  %v4255_v61 = vpop.f32.mrf.mxu1 }
 0x242   : > { %3873 = vst [vmem:[%s4995_s23 + $0x20] sm:$0xff] %v3853_v38   ;;  %v2971_v36 = vadd.f32 %v5640_v2, %v4088_v42  ;;  %3308 = vst [vmem:[%s4997_s17 + $0x28] sm:$0xff] %v3260_v52  ;;  %v3281_v11 = vadd.f32 %v4255_v61, %v5664_v37  ;;  %v3023_v51 = vadd.f32 %v5622_v60, %v3000_v1 }
 0x243   : > { %v4090_v13 = vpop.f32.mrf.mxu0  ;;  %v3272_v50 = vpop.f32.mrf.mxu1 }
 0x244   : > { %v3001_v41 = vadd.f32 %v2971_v36, %v2348_v30  ;;  %v4091_v57 = vadd.f32 %v4090_v13, %v4089_v28  ;;  %3313 = vst [vmem:[%s4997_s17 + $0x50] sm:$0xff] %v3281_v11  ;;  %v3273_v14 = vadd.f32 %v5664_v37, %v3272_v50 }
 0x245   : > { %v4092_v3 = vpop.f32.mrf.mxu0  ;;  %v4256_v56 = vpop.f32.mrf.mxu1 }
 0x246   : > { %v3024_v2 = vadd.f32 %v5622_v60, %v3001_v41  ;;  %v2976_v39 = vadd.f32 %v4091_v57, %v5650_v62  ;;  %3311 = vst [vmem:[%s4997_s17 + $0x40] sm:$0xff] %v3273_v14  ;;  %v3284_v17 = vadd.f32 %v4256_v56, %v5664_v37 }
 0x247   : > { %v4093_v0 = vpop.f32.mrf.mxu0  ;;  %v3275_v16 = vpop.f32.mrf.mxu1 }
 0x248   : > { %v3858_v27 = vpack.c.bf16 %v3024_v2, %v3023_v51  ;;  %v4094_v53 = vadd.f32 %v4093_v0, %v4092_v3  ;;  %v3002_v59 = vadd.f32 %v2976_v39, %v2353_v29  ;;  %3314 = vst [vmem:[%s4997_s17 + $0x58] sm:$0xff] %v3284_v17  ;;  %v3276_v8 = vadd.f32 %v5664_v37, %v3275_v16 }
 0x249   : > { %v4095_v62 = vpop.f32.mrf.mxu0  ;;  %v4259_v32 = vpop.f32.mrf.mxu1 }
 0x24a   : > { %3874 = vst [vmem:[%s4995_s23 + $0x28] sm:$0xff] %v3858_v27   ;;  %v2979_v10 = vadd.f32 %v4094_v53, %v5659_v25  ;;  %3312 = vst [vmem:[%s4997_s17 + $0x48] sm:$0xff] %v3276_v8  ;;  %v3297_v24 = vadd.f32 %v4259_v32, %v5664_v37  ;;  %v3025_v25 = vadd.f32 %v5622_v60, %v3002_v59 }
 0x24b   : > { %v4096_v18 = vpop.f32.mrf.mxu0  ;;  %v3288_v46 = vpop.f32.mrf.mxu1 }
 0x24c   : > { %v3003_v33 = vadd.f32 %v2979_v10, %v2356_v48  ;;  %v4097_v47 = vadd.f32 %v4096_v18, %v4095_v62  ;;  %3317 = vst [vmem:[%s4997_s17 + $0x70] sm:$0xff] %v3297_v24  ;;  %v3289_v49 = vadd.f32 %v5664_v37, %v3288_v46 }
 0x24d   : > { %v4098_v43 = vpop.f32.mrf.mxu0  ;;  %v4260_v34 = vpop.f32.mrf.mxu1 }
 0x24e   : > { %v3026_v54 = vadd.f32 %v5622_v60, %v3003_v33  ;;  %v2984_v58 = vadd.f32 %v5646_v40, %v4097_v47  ;;  %3315 = vst [vmem:[%s4997_s17 + $0x60] sm:$0xff] %v3289_v49  ;;  %v3300_v4 = vadd.f32 %v4260_v34, %v5664_v37 }
 0x24f   : > { %v4099_v23 = vpop.f32.mrf.mxu0  ;;  %v3291_v45 = vpop.f32.mrf.mxu1 }
 0x250   : > { %v3863_v21 = vpack.c.bf16 %v3026_v54, %v3025_v25  ;;  %v4100_v9 = vadd.f32 %v4099_v23, %v4098_v43  ;;  %v3004_v40 = vadd.f32 %v2984_v58, %v5609_v44  ;;  %3318 = vst [vmem:[%s4997_s17 + $0x78] sm:$0xff] %v3300_v4  ;;  %v3292_v7 = vadd.f32 %v5664_v37, %v3291_v45 }
 0x252   : > { %3875 = vst [vmem:[%s4995_s23 + $0x30] sm:$0xff] %v3863_v21   ;;  %v2987_v12 = vadd.f32 %v5655_v26, %v4100_v9  ;;  %3316 = vst [vmem:[%s4997_s17 + $0x68] sm:$0xff] %v3292_v7  ;;  %v3027_v44 = vadd.f32 %v5622_v60, %v3004_v40 }
 0x254   : > { %v3005_v5 = vadd.f32 %v2987_v12, %v5613_v6 }
 0x256   : > { %v3028_v26 = vadd.f32 %v5622_v60, %v3005_v5 }
 0x257   : > { %4619 = shalt.err (!%p4616_p1)
}
 0x258   : > { %s4620_s17 = scalar_lea.hbm %s5740_s19, 2048  ;;  %s4624_s25 = scalar_lea.hbm %s5902_s7, 8192 }
 0x259   : > { %p4621_p7 = scmp.ne.s32.totalorder %s5740_s19, %s4620_s17  ;;  %p4625_p0 = scmp.lt.s32.totalorder %s5740_s19, %s5902_s7 }
 0x25a   : > { %p4626_p8 = scmp.lt.s32.totalorder %s4624_s25, %s4620_s17 }
 0x25b   : > { %p4622_p9 = pnand %p4621_p7, %p5903_p10 }
 0x25c   : > { %p4627_p11 = por %p4626_p8, %p4625_p0 }
 0x25d   : > { %p4623_p13 = pneg %p4622_p9 }
 0x25f   : > { %p4628_p3 = pnand %p4627_p11, %p4623_p13 }
 0x261   : > { %4631 = shalt.err (!%p4628_p3)
}
 0x262   : > { %s4771_s6 = smov 128   ;;  %s4772_s20 = smov 8   ;;  %v3868_v6 = vpack.c.bf16 %v3028_v26, %v3027_v44 }
 0x263   : > { %4272 = dma.vmem_to_hbm [thread:$0]  (%p5903_p10), %s5742_s1, 2048, %s5740_s19, %s3325_s30, %s4771_s6, %s4771_s6, %s4772_s20  }
 0x264   : > { %s5904_s11 = sld [smem:[#allocation26_spill]]  ;;  %3876 = vst [vmem:[%s4995_s23 + $0x38] sm:$0xff] %v3868_v6   ;;  %s3320_s12 = scalar_lea.sflag [#allocation5], %s4991_s4 }
 0x265   : > { %s4632_s8 = scalar_lea.vmem %s5777_s16, 1024  ;;  %s4773_s1 = smov [#allocation9]  }
 0x266   : > { %p4633_p12 = scmp.ne.s32.totalorder %s5777_s16, %s4632_s8  ;;  %s4636_s19 = sshll.u32 %s4773_s1, 4  ;;  %s4637_s19 = int_to_ptr.vmem [resolvable:$false] %s4636_s19 }
 0x267   : > { %s4638_s30 = scalar_lea.vmem %s4637_s19, 2048  ;;  %p4639_p6 = scmp.lt.s32.totalorder %s5777_s16, %s4637_s19 }
 0x268   : > { %p4634_p2 = pnand %p4633_p12, %p5903_p10  ;;  %p4640_p5 = scmp.lt.s32.totalorder %s4638_s30, %s4632_s8 }
 0x26a   : > { %s5905_s25 = smov %s5904_s11  ;;  %s5784_s27 = scalar_lea.hbm %s5904_s11, %s3770_s24 }
 0x26b   : > { %p4635_p4 = pneg %p4634_p2  ;;  %p4641_p1 = por %p4640_p5, %p4639_p6 }
 0x26d   : > { %p4642_p7 = pnand %p4641_p1, %p4635_p4 }
 0x26f   : > { %4645 = shalt.err (!%p4642_p7)
}
 0x270   : > { %s4646_s23 = scalar_lea.hbm %s5784_s27, 1024  ;;  %s4650_s6 = scalar_lea.hbm %s5905_s25, 4096 }
 0x271   : > { %p4647_p9 = scmp.ne.s32.totalorder %s5784_s27, %s4646_s23  ;;  %p4651_p8 = scmp.lt.s32.totalorder %s5784_s27, %s5905_s25 }
 0x272   : > { %p4652_p11 = scmp.lt.s32.totalorder %s4650_s6, %s4646_s23 }
 0x273   : > { %p4648_p13 = pnand %p4647_p9, %p5903_p10 }
 0x274   : > { %p4653_p3 = por %p4652_p11, %p4651_p8 }
 0x275   : > { %p4649_p0 = pneg %p4648_p13 }
 0x277   : > { %p4654_p12 = pnand %p4653_p3, %p4649_p0 }
 0x279   : > { %4657 = shalt.err (!%p4654_p12)
}
 0x27a   : > { %s4774_s17 = smov 64   ;;  %s4775_s11 = smov 4  }
 0x27b   : > { %4271 = dma.vmem_to_hbm [thread:$0]  (%p5903_p10), %s5777_s16, 1024, %s5784_s27, %s3320_s12, %s4774_s17, %s4774_s17, %s4775_s11  }
 0x27c PF: > { %s5906_s8 = sld [smem:[#allocation16_spill]]  ;;  %p4298_p2 = scmp.ge.s32.totalorder %s4760_s15, 2 }
 0x27d   : > { %s5907_s1 = sld [smem:[#allocation20_spill]] }
 0x282   : > { %s3375_s19 = sand.u32 1, %s5906_s8  }
 0x283   : > { %p5908_p4 = scmp.ne.s32.totalorder %s5907_s1, 0  ;;  %s3376_s30 = scalar_lea.sflag [#allocation5], %s3375_s19 }
 0x285   : > { %p4287_p6 = pnand %p4298_p2, %p5908_p4 }
 0x287   : > { %p4288_p5 = pneg %p4287_p6 }
 0x289   : > { %4711 = dma.done.wait (%p4288_p5), %s3376_s30, 1024  }
 0x28a   : > { %4713 = vsyncadd (%p4288_p5), %s3376_s30, 4294966272  ;;  %s3385_s23 = scalar_lea.sflag [#allocation11], %s3375_s19 }
 0x28b   : > { %4715 = dma.done.wait (%p4288_p5), %s3385_s23, 2048  }
 0x28c   : > { %4717 = vsyncadd (%p4288_p5), %s3385_s23, 4294965248  ;;  %s29_s15 = sadd.s32 1, %s4760_s15   ;;  %s5909_s11 = sld [smem:[#allocation18_spill]] }
 0x28d   : > { %p26_p1 = scmp.ge.s32.totalorder %s29_s15, 6   ;;  %s5910_s4 = sld [smem:[#allocation21_spill]] }
 0x28e   : > { %s5911_s27 = smov %s4724_s28  ;;  %s5912_s28 = smov %s4728_s29 }
 0x28f   : > { %s5913_s29 = smov %s4963_s13  ;;  %s5914_s30 = smov %s4736_s9 }
 0x290   : > { %s5915_s9 = smov %s4740_s10  ;;  %s5916_s10 = smov %s4958_s21 }
 0x291   : > { %s5917_s12 = smov %s4756_s14  ;;  %s5919_s14 = smov %s5925_s22 }
 0x292   :  { %28 = sbr.rel (!%p26_p1) target bundleno = 19 (0x13), region = 129 }
 0x293   : > { %s5918_s13 = smov %s5910_s4 }
 0x297   :  { %3390 = vsyncpa [#allocation4], 1 }
 0x298   :  { %3392 = vsyncpa [#allocation4 + $0x1], 1 }
 0x299   :  { %3393 = vsyncpa [#allocation7], 1 }
 0x29a   :  { %3394 = vsyncpa [#allocation5], 1 }
 0x29b   :  { %3396 = vsyncpa [#allocation5 + $0x1], 1 }
 0x29c   :  { %3397 = vsyncpa [#allocation11], 1 }
 0x29d   :  { %3399 = vsyncpa [#allocation11 + $0x1], 1 }

</bundles_post_ra>
